<compile_context>
chip_gen: v5e
topology: v5e:2x2
jax: 0.10.0
libtpu: 0.0.40
codegen_flags: <defaults>
</compile_context>

<pallas_src>
import functools

import jax
import jax.numpy as jnp
from jax.experimental import pallas as pl
from jax.experimental.pallas import tpu as pltpu


# ------------------------------ fused kernel ---------------------------------

def pse_fused_kernel(x_ref, me_ref, w1_ref, b1_ref, w2_ref, b2_ref,
                     wms_ref, we_ref, b3_ref, o_ref, *, s_dim, e_dim):
    """x_ref: (tile*S, C) pixels; me_ref: (tile, S+E) = [mask | extra]."""
    me = me_ref[...]                       # (TN, S+E)
    tn = me.shape[0]
    h2_dim = w2_ref.shape[1]

    mask = me[:, :s_dim]                   # (TN, S) of 0/1 floats
    extra = me[:, s_dim:s_dim + e_dim]     # (TN, E)

    # ---- MLP1: two MXU matmuls, folded-BN shift + ReLU epilogues -------------
    h = jnp.dot(x_ref[...], w1_ref[...], preferred_element_type=jnp.float32)
    h = jnp.maximum(h + b1_ref[...], 0.0)                     # (TN*S, H1)
    h = jnp.dot(h, w2_ref[...], preferred_element_type=jnp.float32)
    h = jnp.maximum(h + b2_ref[...], 0.0)                     # (TN*S, H2)

    # Fold the 0/1 mask into the epilogue: since mask^2 == mask,
    # sum((m*h)^2) == sum(m*h^2), so a single masked h feeds both moments.
    h = h.reshape(tn, s_dim, h2_dim) * mask[:, :, None]       # (TN, S, H2)

    # ---- masked mean / std pooling: one 128-lane-wide S reduction ------------
    sums = jnp.sum(jnp.concatenate([h, h * h], axis=-1), axis=1)  # (TN, 2*H2)
    ssum = sums[:, :h2_dim]                                    # sum m*h
    sqsum = sums[:, h2_dim:]                                   # sum m*h^2
    cnt = jnp.sum(mask, axis=1, keepdims=True)                 # (TN, 1)
    mean = ssum / jnp.maximum(cnt, 1.0)                        # clamp guards cnt==0
    # Exact float compare is safe: cnt is a sum of 0/1 floats.  The outer max
    # only guards the degenerate fully-masked case (matches d[d == 1] = 2).
    d = jnp.maximum(jnp.where(cnt == 1.0, 2.0, cnt), 2.0)
    # One-pass variance (sqsum - cnt*mean^2); clamp to >= 0.  Matches the
    # reference to ~1e-6 at these scales.
    var = jnp.maximum(sqsum - cnt * mean * mean, 0.0) / (d - 1.0)
    std = jnp.sqrt(var + 1e-31)

    # ---- MLP2 (Linear + folded-BN shift + ReLU) ------------------------------
    ms = jnp.concatenate([mean, std], axis=-1)                 # (TN, 2*H2), lane-dense K
    z = jnp.dot(ms, wms_ref[...], preferred_element_type=jnp.float32)
    z = z + jnp.dot(extra, we_ref[...], preferred_element_type=jnp.float32)
    o_ref[...] = jnp.maximum(z + b3_ref[...], 0.0)


# -------------------------------- wrapper -------------------------------------

def fold_params(params):
    """Fold eval-mode BatchNorm scales into weight columns; keep the shifts."""
    return dict(
        w1=params["w1"] * params["s1"],                                       # (C, H1)
        b1=params["b1"],                                                      # (1, H1)
        w2=params["w2"] * params["s2"],                                       # (H1, H2)
        b2=params["b2"],                                                      # (1, H2)
        wms=jnp.concatenate([params["wm"], params["ws"]], 0) * params["s3"],  # (2H2, H3)
        we=params["we"] * params["s3"],                                       # (E, H3)
        b3=params["b3"],                                                      # (1, H3)
    )


def _round_up(n, m):
    return ((n + m - 1) // m) * m


def pixel_set_encoder(pixels, mask, extra, folded, tile_n=None, max_tile=256):
    """pixels: (B,T,C,S), mask: (B,T,S), extra: (B,E) -> (B,T,H3)."""
    B, T, C, S = pixels.shape
    N = B * T
    E = extra.shape[-1]
    H3 = folded["wms"].shape[1]

    # Row tile over N (multiple of 8); pad N up with zero rows (mask==0 there).
    tile = tile_n if tile_n is not None else min(max_tile, _round_up(N, 8))
    assert tile % 8 == 0 and tile > 0, tile
    n_pad = _round_up(N, tile)
    grid = (n_pad // tile,)

    # Pixels -> (N*S, C): the MXU-friendly layout for MLP1 (cheap XLA transpose
    # of a small tensor, done once in the wrapper, not per grid step).
    x2 = jnp.transpose(pixels.reshape(N, C, S), (0, 2, 1))
    x2 = x2.reshape(N * S, C).astype(jnp.float32)
    # mask + extra packed lane-dense into one (N, S+E) array.
    mask_f = mask.reshape(N, S).astype(jnp.float32)
    extra_rep = jnp.broadcast_to(extra[:, None, :], (B, T, E)).reshape(N, E)
    me = jnp.concatenate([mask_f, extra_rep.astype(jnp.float32)], axis=1)  # (N, S+E)

    if n_pad != N:
        x2 = jnp.pad(x2, ((0, (n_pad - N) * S), (0, 0)))
        me = jnp.pad(me, ((0, n_pad - N), (0, 0)))

    kernel = functools.partial(pse_fused_kernel, s_dim=S, e_dim=E)

    def row_spec(rows_per_tile, cols):
        return pl.BlockSpec((rows_per_tile, cols), lambda i: (i, 0))

    def const_spec(shape):
        return pl.BlockSpec(tuple(shape), lambda i: (0,) * len(shape))

    out = pl.pallas_call(
        kernel,
        out_shape=jax.ShapeDtypeStruct((n_pad, H3), jnp.float32),
        grid=grid,
        in_specs=[
            row_spec(tile * S, C),            # pixels (N*S, C)
            row_spec(tile, S + E),            # [mask | extra] (N, S+E)
            const_spec(folded["w1"].shape), const_spec(folded["b1"].shape),
            const_spec(folded["w2"].shape), const_spec(folded["b2"].shape),
            const_spec(folded["wms"].shape), const_spec(folded["we"].shape),
            const_spec(folded["b3"].shape),
        ],
        out_specs=row_spec(tile, H3),
        compiler_params=pltpu.CompilerParams(
            dimension_semantics=("parallel",),          # megacore shard on v7x
            vmem_limit_bytes=32 * 1024 * 1024),         # safe on v5e/v6e/v7x
    )(x2, me,
      folded["w1"], folded["b1"], folded["w2"], folded["b2"],
      folded["wms"], folded["we"], folded["b3"])

    return out[:N].reshape(B, T, H3)


# ------------------------- pure-JAX reference (check) -------------------------

def reference(pixels, mask, extra, params):
    HI = jax.lax.Precision.HIGHEST
    B, T, C, S = pixels.shape
    N = B * T
    x = jnp.transpose(pixels.reshape(N, C, S), (0, 2, 1))            # (N, S, C)
    h = jnp.matmul(x, params["w1"], precision=HI) * params["s1"] + params["b1"]
    h = jnp.maximum(h, 0.0)
    h = jnp.matmul(h, params["w2"], precision=HI) * params["s2"] + params["b2"]
    h = jnp.maximum(h, 0.0)
    m = mask.reshape(N, S).astype(jnp.float32)
    cnt = m.sum(-1, keepdims=True)
    mean = (h * m[:, :, None]).sum(1) / cnt
    d = jnp.where(cnt == 1.0, 2.0, cnt)
    cent = (h - mean[:, None, :]) * m[:, :, None]
    std = jnp.sqrt((cent ** 2).sum(1) / (d - 1.0) + 1e-31)
    extra_rep = jnp.broadcast_to(
        extra[:, None, :], (B, T, extra.shape[-1])).reshape(N, -1)
    z = (jnp.dot(mean, params["wm"], precision=HI)
         + jnp.dot(std, params["ws"], precision=HI)
         + jnp.dot(extra_rep, params["we"], precision=HI))
    out = jnp.maximum(z * params["s3"] + params["b3"], 0.0)
    return out.reshape(B, T, -1)


# ----------------------------- param construction -----------------------------

def bn_fold(gamma, beta, rmean, rvar, eps=1e-5):
    scale = gamma / jnp.sqrt(rvar + eps)
    shift = beta - rmean * scale
    return scale[None, :], shift[None, :]


def make_params(key, C, H1, H2, E, H3):
    ks = jax.random.split(key, 12)
    w1 = 0.2 * jax.random.normal(ks[0], (C, H1), jnp.float32)
    w2 = 0.2 * jax.random.normal(ks[1], (H1, H2), jnp.float32)
    # mlp2 weight (concat dim = 2*H2 + E) split into mean/std/extra blocks.
    wfull = 0.1 * jax.random.normal(ks[2], (2 * H2 + E, H3), jnp.float32)
    wm, ws, we = wfull[:H2], wfull[H2:2 * H2], wfull[2 * H2:]

    def bn(k, dim):
        a, b, c, d = jax.random.split(k, 4)
        gamma = 1.0 + 0.1 * jax.random.normal(a, (dim,), jnp.float32)
        beta = 0.1 * jax.random.normal(b, (dim,), jnp.float32)
        rmean = 0.05 * jax.random.normal(c, (dim,), jnp.float32)
        rvar = 1.0 + 0.2 * jax.random.uniform(d, (dim,), jnp.float32)
        return bn_fold(gamma, beta, rmean, rvar)

    s1, b1 = bn(ks[3], H1)
    s2, b2 = bn(ks[4], H2)
    s3, b3 = bn(ks[5], H3)
    return dict(w1=w1, s1=s1, b1=b1, w2=w2, s2=s2, b2=b2,
                wm=wm, ws=ws, we=we, s3=s3, b3=b3)


# ----------------------------------- main --------------------------------------

if __name__ == "__main__":
    B, T, C, S = 2, 8, 4, 16          # batch, seq-len, channels, pixels-per-set
    H1, H2, E, H3 = 32, 64, 4, 128    # mlp1=[4,32,64], extra=4, mlp2=[132,128]

    key = jax.random.PRNGKey(0)
    k_pix, k_mask, k_extra, k_par = jax.random.split(key, 4)

    pixels = jax.random.normal(k_pix, (B, T, C, S), jnp.float32)
    mask = (jax.random.uniform(k_mask, (B, T, S)) > 0.3).astype(jnp.float32)
    mask = mask.at[..., 0].set(1.0)   # guarantee at least one valid pixel
    extra = jax.random.normal(k_extra, (B, E), jnp.float32)

    params = make_params(k_par, C, H1, H2, E, H3)
    folded = fold_params(params)

    # tile_n=8 -> grid=(2,): exercises the tiled / pipelined / parallel path
    # even at the tiny demo size (production N uses the auto-picked <=256 rows).
    out = pixel_set_encoder(pixels, mask, extra, folded, tile_n=8)
    out = jax.block_until_ready(out)

    ref = reference(pixels, mask, extra, params)
    assert out.shape == (B, T, H3), out.shape
    err = float(jnp.max(jnp.abs(out - ref)))
    assert jnp.allclose(out, ref, rtol=1e-4, atol=1e-4), err

    print("KERNEL_OK")
</pallas_src>

<mosaic_0001>
module attributes {stable_mosaic.version = 11 : i64} {
  func.func @pse_fused_kernel(%arg0: i32, %arg1: memref<128x4xf32, #tpu.memory_space<vmem>>, %arg2: memref<8x20xf32, #tpu.memory_space<vmem>>, %arg3: memref<4x32xf32, #tpu.memory_space<vmem>>, %arg4: memref<1x32xf32, #tpu.memory_space<vmem>>, %arg5: memref<32x64xf32, #tpu.memory_space<vmem>>, %arg6: memref<1x64xf32, #tpu.memory_space<vmem>>, %arg7: memref<128x128xf32, #tpu.memory_space<vmem>>, %arg8: memref<4x128xf32, #tpu.memory_space<vmem>>, %arg9: memref<1x128xf32, #tpu.memory_space<vmem>>, %arg10: memref<8x128xf32, #tpu.memory_space<vmem>>) attributes {dimension_semantics = [#tpu.dimension_semantics<parallel>], iteration_bounds = array<i64: 2>, scalar_prefetch = 0 : i64, scratch_operands = 0 : i64, tpu.core_type = #tpu.core_type<tc>, window_params = [{transform_indices = @transform_0, window_bounds = array<i64: 128, 4>}, {transform_indices = @transform_1, window_bounds = array<i64: 8, 20>}, {pipeline_mode = #tpu.pipeline_mode<synchronous>, transform_indices = @transform_2, window_bounds = array<i64: 4, 32>}, {pipeline_mode = #tpu.pipeline_mode<synchronous>, transform_indices = @transform_3, window_bounds = array<i64: 1, 32>}, {pipeline_mode = #tpu.pipeline_mode<synchronous>, transform_indices = @transform_4, window_bounds = array<i64: 32, 64>}, {pipeline_mode = #tpu.pipeline_mode<synchronous>, transform_indices = @transform_5, window_bounds = array<i64: 1, 64>}, {pipeline_mode = #tpu.pipeline_mode<synchronous>, transform_indices = @transform_6, window_bounds = array<i64: 128, 128>}, {pipeline_mode = #tpu.pipeline_mode<synchronous>, transform_indices = @transform_7, window_bounds = array<i64: 4, 128>}, {pipeline_mode = #tpu.pipeline_mode<synchronous>, transform_indices = @transform_8, window_bounds = array<i64: 1, 128>}, {transform_indices = @transform_9, window_bounds = array<i64: 8, 128>}]} {
    %c0 = arith.constant 0 : index
    %c0_0 = arith.constant 0 : index
    %0 = vector.load %arg2[%c0, %c0_0] : memref<8x20xf32, #tpu.memory_space<vmem>>, vector<8x20xf32>
    %1 = vector.extract_strided_slice %0 {offsets = [0, 0], sizes = [8, 16], strides = [1, 1]} : vector<8x20xf32> to vector<8x16xf32>
    %2 = vector.extract_strided_slice %0 {offsets = [0, 16], sizes = [8, 4], strides = [1, 1]} : vector<8x20xf32> to vector<8x4xf32>
    %c0_1 = arith.constant 0 : index
    %c0_2 = arith.constant 0 : index
    %3 = vector.load %arg1[%c0_1, %c0_2] : memref<128x4xf32, #tpu.memory_space<vmem>>, vector<128x4xf32>
    %c0_3 = arith.constant 0 : index
    %c0_4 = arith.constant 0 : index
    %4 = vector.load %arg3[%c0_3, %c0_4] : memref<4x32xf32, #tpu.memory_space<vmem>>, vector<4x32xf32>
    %cst = arith.constant dense<0.000000e+00> : vector<128x32xf32>
    %5 = tpu.matmul %3, %4, %cst {dimension_numbers = #tpu.dot_dimension_numbers<[1], [0], [0], [1], [0, 0, 1, 1], [], []>} : vector<128x4xf32>, vector<4x32xf32>, vector<128x32xf32> -> vector<128x32xf32>
    %c0_5 = arith.constant 0 : index
    %c0_6 = arith.constant 0 : index
    %6 = vector.load %arg4[%c0_5, %c0_6] : memref<1x32xf32, #tpu.memory_space<vmem>>, vector<1x32xf32>
    %7 = vector.broadcast %6 : vector<1x32xf32> to vector<128x32xf32>
    %8 = arith.addf %5, %7 : vector<128x32xf32>
    %cst_7 = arith.constant 0.000000e+00 : f32
    %9 = vector.broadcast %cst_7 : f32 to vector<128x32xf32>
    %10 = arith.maximumf %8, %9 : vector<128x32xf32>
    %c0_8 = arith.constant 0 : index
    %c0_9 = arith.constant 0 : index
    %11 = vector.load %arg5[%c0_8, %c0_9] : memref<32x64xf32, #tpu.memory_space<vmem>>, vector<32x64xf32>
    %cst_10 = arith.constant dense<0.000000e+00> : vector<128x64xf32>
    %12 = tpu.matmul %10, %11, %cst_10 {dimension_numbers = #tpu.dot_dimension_numbers<[1], [0], [0], [1], [0, 0, 1, 1], [], []>} : vector<128x32xf32>, vector<32x64xf32>, vector<128x64xf32> -> vector<128x64xf32>
    %c0_11 = arith.constant 0 : index
    %c0_12 = arith.constant 0 : index
    %13 = vector.load %arg6[%c0_11, %c0_12] : memref<1x64xf32, #tpu.memory_space<vmem>>, vector<1x64xf32>
    %14 = vector.broadcast %13 : vector<1x64xf32> to vector<128x64xf32>
    %15 = arith.addf %12, %14 : vector<128x64xf32>
    %cst_13 = arith.constant 0.000000e+00 : f32
    %16 = vector.broadcast %cst_13 : f32 to vector<128x64xf32>
    %17 = arith.maximumf %15, %16 : vector<128x64xf32>
    %18 = vector.shape_cast %17 : vector<128x64xf32> to vector<8x16x64xf32>
    %19 = vector.shape_cast %1 : vector<8x16xf32> to vector<8x16x1xf32>
    %20 = vector.broadcast %19 : vector<8x16x1xf32> to vector<8x16x64xf32>
    %21 = arith.mulf %18, %20 : vector<8x16x64xf32>
    %22 = arith.mulf %21, %21 : vector<8x16x64xf32>
    %23 = tpu.concatenate %21, %22 in 2 : vector<8x16x64xf32>, vector<8x16x64xf32> -> vector<8x16x128xf32>
    %cst_14 = arith.constant dense<0.000000e+00> : vector<8x128xf32>
    %24 = vector.multi_reduction <add>, %23, %cst_14 [1] : vector<8x16x128xf32> to vector<8x128xf32>
    %25 = vector.extract_strided_slice %24 {offsets = [0, 0], sizes = [8, 64], strides = [1, 1]} : vector<8x128xf32> to vector<8x64xf32>
    %26 = vector.extract_strided_slice %24 {offsets = [0, 64], sizes = [8, 64], strides = [1, 1]} : vector<8x128xf32> to vector<8x64xf32>
    %cst_15 = arith.constant dense<0.000000e+00> : vector<8xf32>
    %27 = vector.multi_reduction <add>, %1, %cst_15 [1] : vector<8x16xf32> to vector<8xf32>
    %28 = vector.shape_cast %27 : vector<8xf32> to vector<8x1xf32>
    %cst_16 = arith.constant 1.000000e+00 : f32
    %29 = vector.broadcast %cst_16 : f32 to vector<8x1xf32>
    %30 = arith.maximumf %28, %29 : vector<8x1xf32>
    %31 = vector.broadcast %30 : vector<8x1xf32> to vector<8x64xf32>
    %32 = arith.divf %25, %31 : vector<8x64xf32>
    %cst_17 = arith.constant 1.000000e+00 : f32
    %33 = vector.broadcast %cst_17 : f32 to vector<8x1xf32>
    %34 = arith.cmpf oeq, %28, %33 : vector<8x1xf32>
    %cst_18 = arith.constant 2.000000e+00 : f32
    %35 = vector.broadcast %cst_18 : f32 to vector<8x1xf32>
    %36 = arith.select %34, %35, %28 : vector<8x1xi1>, vector<8x1xf32>
    %cst_19 = arith.constant 2.000000e+00 : f32
    %37 = vector.broadcast %cst_19 : f32 to vector<8x1xf32>
    %38 = arith.maximumf %36, %37 : vector<8x1xf32>
    %39 = vector.broadcast %28 : vector<8x1xf32> to vector<8x64xf32>
    %40 = arith.mulf %39, %32 : vector<8x64xf32>
    %41 = arith.mulf %40, %32 : vector<8x64xf32>
    %42 = arith.subf %26, %41 : vector<8x64xf32>
    %cst_20 = arith.constant 0.000000e+00 : f32
    %43 = vector.broadcast %cst_20 : f32 to vector<8x64xf32>
    %44 = arith.maximumf %42, %43 : vector<8x64xf32>
    %cst_21 = arith.constant 1.000000e+00 : f32
    %45 = vector.broadcast %cst_21 : f32 to vector<8x1xf32>
    %46 = arith.subf %38, %45 : vector<8x1xf32>
    %47 = vector.broadcast %46 : vector<8x1xf32> to vector<8x64xf32>
    %48 = arith.divf %44, %47 : vector<8x64xf32>
    %cst_22 = arith.constant 9.99999979E-32 : f32
    %49 = vector.broadcast %cst_22 : f32 to vector<8x64xf32>
    %50 = arith.addf %48, %49 : vector<8x64xf32>
    %51 = math.sqrt %50 : vector<8x64xf32>
    %52 = tpu.concatenate %32, %51 in 1 : vector<8x64xf32>, vector<8x64xf32> -> vector<8x128xf32>
    %c0_23 = arith.constant 0 : index
    %c0_24 = arith.constant 0 : index
    %53 = vector.load %arg7[%c0_23, %c0_24] : memref<128x128xf32, #tpu.memory_space<vmem>>, vector<128x128xf32>
    %cst_25 = arith.constant dense<0.000000e+00> : vector<8x128xf32>
    %54 = tpu.matmul %52, %53, %cst_25 {dimension_numbers = #tpu.dot_dimension_numbers<[1], [0], [0], [1], [0, 0, 1, 1], [], []>} : vector<8x128xf32>, vector<128x128xf32>, vector<8x128xf32> -> vector<8x128xf32>
    %c0_26 = arith.constant 0 : index
    %c0_27 = arith.constant 0 : index
    %55 = vector.load %arg8[%c0_26, %c0_27] : memref<4x128xf32, #tpu.memory_space<vmem>>, vector<4x128xf32>
    %cst_28 = arith.constant dense<0.000000e+00> : vector<8x128xf32>
    %56 = tpu.matmul %2, %55, %cst_28 {dimension_numbers = #tpu.dot_dimension_numbers<[1], [0], [0], [1], [0, 0, 1, 1], [], []>} : vector<8x4xf32>, vector<4x128xf32>, vector<8x128xf32> -> vector<8x128xf32>
    %57 = arith.addf %54, %56 : vector<8x128xf32>
    %c0_29 = arith.constant 0 : index
    %c0_30 = arith.constant 0 : index
    %58 = vector.load %arg9[%c0_29, %c0_30] : memref<1x128xf32, #tpu.memory_space<vmem>>, vector<1x128xf32>
    %59 = vector.broadcast %58 : vector<1x128xf32> to vector<8x128xf32>
    %60 = arith.addf %57, %59 : vector<8x128xf32>
    %cst_31 = arith.constant 0.000000e+00 : f32
    %61 = vector.broadcast %cst_31 : f32 to vector<8x128xf32>
    %62 = arith.maximumf %60, %61 : vector<8x128xf32>
    %c0_32 = arith.constant 0 : index
    %c0_33 = arith.constant 0 : index
    %63 = vector.load %arg10[%c0_32, %c0_33] : memref<8x128xf32, #tpu.memory_space<vmem>>, vector<8x128xf32>
    tpu.vector_store %arg10[%c0_32, %c0_33], %62 {strides = array<i32>} : memref<8x128xf32, #tpu.memory_space<vmem>>, vector<8x128xf32>,
    return
  }
  func.func @transform_0(%arg0: i32) -> (i32, i32) {
    %c0_i32 = arith.constant 0 : i32
    %c0_i32_0 = arith.constant 0 : i32
    return %arg0, %c0_i32 : i32, i32
  }
  func.func @transform_1(%arg0: i32) -> (i32, i32) {
    %c0_i32 = arith.constant 0 : i32
    %c0_i32_0 = arith.constant 0 : i32
    return %arg0, %c0_i32 : i32, i32
  }
  func.func @transform_2(%arg0: i32) -> (i32, i32) {
    %c0_i32 = arith.constant 0 : i32
    %c0_i32_0 = arith.constant 0 : i32
    %c0_i32_1 = arith.constant 0 : i32
    return %c0_i32, %c0_i32_0 : i32, i32
  }
  func.func @transform_3(%arg0: i32) -> (i32, i32) {
    %c0_i32 = arith.constant 0 : i32
    %c0_i32_0 = arith.constant 0 : i32
    %c0_i32_1 = arith.constant 0 : i32
    return %c0_i32, %c0_i32_0 : i32, i32
  }
  func.func @transform_4(%arg0: i32) -> (i32, i32) {
    %c0_i32 = arith.constant 0 : i32
    %c0_i32_0 = arith.constant 0 : i32
    %c0_i32_1 = arith.constant 0 : i32
    return %c0_i32, %c0_i32_0 : i32, i32
  }
  func.func @transform_5(%arg0: i32) -> (i32, i32) {
    %c0_i32 = arith.constant 0 : i32
    %c0_i32_0 = arith.constant 0 : i32
    %c0_i32_1 = arith.constant 0 : i32
    return %c0_i32, %c0_i32_0 : i32, i32
  }
  func.func @transform_6(%arg0: i32) -> (i32, i32) {
    %c0_i32 = arith.constant 0 : i32
    %c0_i32_0 = arith.constant 0 : i32
    %c0_i32_1 = arith.constant 0 : i32
    return %c0_i32, %c0_i32_0 : i32, i32
  }
  func.func @transform_7(%arg0: i32) -> (i32, i32) {
    %c0_i32 = arith.constant 0 : i32
    %c0_i32_0 = arith.constant 0 : i32
    %c0_i32_1 = arith.constant 0 : i32
    return %c0_i32, %c0_i32_0 : i32, i32
  }
  func.func @transform_8(%arg0: i32) -> (i32, i32) {
    %c0_i32 = arith.constant 0 : i32
    %c0_i32_0 = arith.constant 0 : i32
    %c0_i32_1 = arith.constant 0 : i32
    return %c0_i32, %c0_i32_0 : i32, i32
  }
  func.func @transform_9(%arg0: i32) -> (i32, i32) {
    %c0_i32 = arith.constant 0 : i32
    %c0_i32_0 = arith.constant 0 : i32
    return %arg0, %c0_i32 : i32, i32
  }
}

</mosaic_0001>

<bundles_post_ra>
// kernel: tpu_custom_call.1
= control target key start
LH: loop header
LB: loop body
LE: loop exit
PB: predicated region body
PF: predicated region fallthrough
CT: control target
= control target key end

     0   :  { %14 = vsyncpa [#allocation3], 0  ;;  %s2829_s0 = inlined_call_operand.vmem [shape: f32[256,4], index: 0, kind: input, shape index: {}]   ;;  %s2830_s1 = inlined_call_operand.vmem [shape: f32[16,20], index: 1, kind: input, shape index: {}]   ;;  %s2831_s2 = inlined_call_operand.vmem [shape: f32[4,32], index: 2, kind: input, shape index: {}]   ;;  %s2832_s3 = inlined_call_operand.vmem [shape: f32[1,32], index: 3, kind: input, shape index: {}]   ;;  %s2833_s4 = inlined_call_operand.vmem [shape: f32[32,64], index: 4, kind: input, shape index: {}]   ;;  %s2834_s5 = inlined_call_operand.vmem [shape: f32[1,64], index: 5, kind: input, shape index: {}]   ;;  %s2835_s6 = inlined_call_operand.vmem [shape: f32[128,128], index: 6, kind: input, shape index: {}]   ;;  %s2836_s7 = inlined_call_operand.vmem [shape: f32[4,128], index: 7, kind: input, shape index: {}]   ;;  %s2837_s8 = inlined_call_operand.vmem [shape: f32[1,128], index: 8, kind: input, shape index: {}]   ;;  %s2838_s9 = inlined_call_operand.hbm [shape: f32[16,128], index: 9, kind: output, shape index: {}]  }
   0x1   :  { %16 = vsyncpa [#allocation3 + $0x1], 0  ;;  %s1837_s30 = smov 0   ;;  %s1839_s10 = smov 0  }
   0x2   :  { %s1841_s11 = smov 0   ;;  %s1843_s12 = smov 0  }
   0x3 LB: > { %s1858_s13 = sadd.s32 4294967295, %s1783_s12   ;;  %s1565_s14 = sadd.s32 4294967294, %s1783_s12   ;;  %s1783_s12 = sphi %s1843_s12, %s2902_s12   ;;  %s1779_s11 = sphi %s1841_s11, %s2901_s11   ;;  %s1775_s10 = sphi %s1839_s10, %s2900_s10   ;;  %s1771_s30 = sphi %s1837_s30, %s2899_s30  }
   0x4   : > { %s1862_s15 = sadd.s32 1, %s1783_s12   ;;  %s228_s16 = sadd.s32 1, %s1779_s11 }
   0x5   : > { %s225_s17 = ssub.s32 %s1783_s12, %s1862_s15  ;;  %p238_p0 = scmp.ne.s32.totalorder %s1779_s11, %s1775_s10 }
   0x6   : > { %p226_p1 = scmp.eq.s32.totalorder %s225_s17, 0  ;;  %p239_p2 = scmp.eq.s32.totalorder %s1858_s13, 1 }
   0x7   : > { %p244_p3 = scmp.ne.s32.totalorder %s1775_s10, %s1771_s30  ;;  %p245_p4 = scmp.eq.s32.totalorder %s1565_s14, 1 }
   0x8   : > { %s1873_s18 = scalar_select %p226_p1, %s1779_s11, %s228_s16  }
   0x9   : > { %p1875_p5 = por %p239_p2, %p238_p0  ;;  %p1879_p6 = por %p245_p4, %p244_p3 }
   0xa   : > { %p1568_p7 = scmp.ge.s32.totalorder %s1783_s12, 1  ;;  %p300_p8 = scmp.lt.s32.totalorder %s1783_s12, 3 }
   0xc   : > { %p301_p9 = pnand %p1568_p7, %p300_p8 }
   0xd   : > { %s1570_s23 = sshll.u32 (!%p301_p9), %s1858_s13, 4  ;;  %p346_p11 = scmp.lt.s32.totalorder (!%p301_p9), %s1858_s13, 1 }
   0xe   : > { %304 = sbr.rel (%p301_p9) target bundleno = 798 (0x31e), region = 56  ;;  %p341_p10 = scmp.lt.s32.totalorder (!%p301_p9), %s1570_s23, 31 }
   0xf   : > { %s1785_s21 = smov (!%p301_p9), 64   ;;  %s1741_s26 = scalar_lea.hbm (!%p301_p9), %s2838_s9, 16 }
  0x13   : > { %v367_v0 = vld [vmem:[%s2831_s2] sm:$0xf]  ;;  %vm421_vm0 = vcmask 1043456   ;;  %s2904_s23 = smov (!%p341_p10, %s1570_s23), 31  ;;  %vm372_vm1 = vcmask 31744   ;;  %v645_v11 = vlaneseq  ;;  %v509_v12 = vld [vmem:[%s2833_s4 + $0x18] sm:$0xff] }
  0x14   : > { %1573 = vmatpush.msk.msra.mxu0 %vm421_vm0, %v367_v0  ;;  %1613 = vmatpush.msk.msra.mxu3 %vm421_vm0, %v367_v0  ;;  %s1571_s24 = sshll.u32 %s2904_s23, 3  ;;  %v508_v23 = vld [vmem:[%s2833_s4 + $0x10] sm:$0xff]  ;;  %v507_v24 = vld [vmem:[%s2833_s4 + $0x8] sm:$0xff]  ;;  %v506_v25 = vld [vmem:[%s2833_s4] sm:$0xff]  ;;  %vm514_vm2 = vcmask 261120   ;;  %vm917_vm3 = vcmask 130048  }
  0x15   : > { %s1894_s27 = scalar_lea.vmem %s2829_s0, %s1571_s24  ;;  %575 = vmatpush.msra.mxu1 %v509_v12  ;;  %1614 = vmatpush.msra.mxu2 %v509_v12  ;;  %v1921_v13 = vshrl.u32 %v645_v11, 7  ;;  %v1966_v30 = vld [vmem:[%s2832_s3] ss:$0 sm:$0xff]  ;;  %vm2839_vm6 = vcmask 523264   ;;  %s1610_s23 = sshll.u32 %s1858_s13, 3 }
  0x16   : > { %v351_v1 = vld [vmem:[%s1894_s27] sm:$0xff]  ;;  %v360_v2 = vld [vmem:[%s1894_s27 + $0x48] sm:$0xff]  ;;  %v361_v4 = vld [vmem:[%s1894_s27 + $0x50] sm:$0xff]  ;;  %s347_s28 = scalar_select %p346_p11, %s1858_s13, 1 }
  0x17   : > { %1574 = vmatmul.msk.f32.vlgmr.msra.gmra.mxu0 %vm372_vm1, %v351_v1  ;;  %1583 = vmatmul.msk.f32.vlgmr.msra.gmra.mxu3 %vm372_vm1, %v360_v2  ;;  %v352_v3 = vld [vmem:[%s1894_s27 + $0x8] sm:$0xff]  ;;  %v353_v5 = vld [vmem:[%s1894_s27 + $0x10] sm:$0xff]  ;;  %v362_v6 = vld [vmem:[%s1894_s27 + $0x58] sm:$0xff]  ;;  %v1941_v20 = vadd.s32 8, %v1921_v13 }
  0x18   : > { %v354_v7 = vld [vmem:[%s1894_s27 + $0x18] sm:$0xff]  ;;  %v363_v8 = vld [vmem:[%s1894_s27 + $0x60] sm:$0xff]  ;;  %v364_v10 = vld [vmem:[%s1894_s27 + $0x68] sm:$0xff]  ;;  %s1572_s29 = sshll.u32 %s347_s28, 3  ;;  %1660 = vset.pattern.permute.xlu1 %v1921_v13  ;;  %1659 = vset.pattern.permute.xlu0 %v1921_v13 }
  0x19   : > { %v355_v9 = vld [vmem:[%s1894_s27 + $0x20] sm:$0xff]  ;;  %s349_s22 = scalar_lea.vmem %s2830_s1, %s1572_s29  ;;  %v356_v14 = vld [vmem:[%s1894_s27 + $0x28] sm:$0xff]  ;;  %v365_v15 = vld [vmem:[%s1894_s27 + $0x70] sm:$0xff]  ;;  %1661 = vset.pattern.permute.xlu2 %v1921_v13  ;;  %576 = vmatpush.msra.mxu1 %v508_v23  ;;  %s1489_s29 = scalar_lea.hbm %s2838_s9, %s1610_s23 }
  0x1a   : > { %v1930_v16 = vld [vmem:[%s349_s22] sm:$0xff]  ;;  %v357_v18 = vld [vmem:[%s1894_s27 + $0x30] sm:$0xff]  ;;  %v366_v19 = vld [vmem:[%s1894_s27 + $0x78] sm:$0xff]  ;;  %1615 = vmatpush.msra.mxu2 %v508_v23  ;;  %s1786_s22 = smov 112   ;;  %s1493_s16 = sshll.u32 %s1489_s29, 4  ;;  %s1494_s16 = int_to_ptr.hbm [resolvable:$true] %s1493_s16 }
  0x1b   : > { %v670_v17 = vperm.slane %v1930_v16, 2  ;;  %v358_v21 = vld [vmem:[%s1894_s27 + $0x38] sm:$0xff]  ;;  %v359_v22 = vld [vmem:[%s1894_s27 + $0x40] sm:$0xff]  ;;  %577 = vmatpush.msra.mxu1 %v507_v24  ;;  %v683_v26 = vperm.slane %v1930_v16, 3  ;;  %v657_v27 = vperm.slane %v1930_v16, 1  ;;  %v696_v28 = vperm.slane %v1930_v16, 4 }
  0x1c   : > { %1616 = vmatpush.msra.mxu2 %v507_v24  ;;  %v644_v29 = vperm.slane %v1930_v16, 0  ;;  %v709_v39 = vperm.slane %v1930_v16, 5  ;;  %v722_v46 = vperm.slane %v1930_v16, 6  ;;  %v735_v60 = vperm.slane %v1930_v16, 7  ;;  %v2014_v23 = vld [vmem:[%s2834_s5] ss:$0 sm:$0xff] }
  0x1d   : > { %578 = vmatpush.msra.mxu1 %v506_v25  ;;  %s1735_s17 = sshra.s32 %s1494_s16, 4  ;;  %s1736_s17 = int_to_ptr.hbm [resolvable:$true] %s1735_s17 }
  0x1e   : > { %1617 = vmatpush.msra.mxu2 %v506_v25  ;;  %s1737_s24 = scalar_lea.hbm %s1736_s17, 8  ;;  %p1742_p1 = scmp.lt.s32.totalorder %s1736_s17, %s2838_s9 }
  0x1f   : > { %1575 = vmatmul.msk.f32.gmra.mxu0 %vm372_vm1, %v352_v3  ;;  %1584 = vmatmul.msk.f32.gmra.mxu3 %vm372_vm1, %v361_v4  ;;  %p1738_p12 = scmp.ne.s32.totalorder %s1736_s17, %s1737_s24  ;;  %p1743_p2 = scmp.lt.s32.totalorder %s1741_s26, %s1737_s24 }
  0x20   : > { %675 = vperm.xlu1 %1660, %v670_v17   ;;  %662 = vperm.xlu0 %1659, %v657_v27  }
  0x21   : > { %649 = vperm.xlu2 %1661, %v644_v29   ;;  %p1739_p13 = pnand %p1738_p12, %p1875_p5  ;;  %p1744_p3 = por %p1743_p2, %p1742_p1 }
  0x23   : > { %p1740_p0 = pneg %p1739_p13 }
  0x25   : > { %p1745_p4 = pnand %p1744_p3, %p1740_p0 }
  0x27   : > { %1576 = vmatmul.msk.f32.gmra.mxu0 %vm372_vm1, %v353_v5  ;;  %1585 = vmatmul.msk.f32.gmra.mxu3 %vm372_vm1, %v362_v6 }
  0x28   : > { %1662 = vset.pattern.permute.xlu1 %v1941_v20  ;;  %701 = vperm.xlu0 %1659, %v696_v28  }
  0x29   : > { %1664 = vset.pattern.permute.xlu2 %v1941_v20 }
  0x2f   : > { %1577 = vmatmul.msk.f32.gmra.mxu0 %vm372_vm1, %v354_v7  ;;  %1586 = vmatmul.msk.f32.gmra.mxu3 %vm372_vm1, %v363_v8 }
  0x30   : > { %681 = vperm.xlu1 %1662, %v670_v17   ;;  %1665 = vset.pattern.permute.xlu0 %v1941_v20 }
  0x31   : > { %655 = vperm.xlu2 %1664, %v644_v29  }
  0x37   : > { %1578 = vmatmul.msk.f32.gmra.mxu0 %vm372_vm1, %v355_v9  ;;  %1587 = vmatmul.msk.f32.gmra.mxu3 %vm372_vm1, %v364_v10 }
  0x38   : > { %1663 = vset.pattern.permute.xlu1 %v1921_v13  ;;  %668 = vperm.xlu0 %1665, %v657_v27  }
  0x39   : > { %694 = vperm.xlu2 %1664, %v683_v26  }
  0x3f   : > { %1579 = vmatmul.msk.f32.gmra.mxu0 %vm372_vm1, %v356_v14  ;;  %1588 = vmatmul.msk.f32.gmra.mxu3 %vm372_vm1, %v365_v15 }
  0x40   : > { %688 = vperm.xlu1 %1663, %v683_v26   ;;  %733 = vperm.xlu0 %1665, %v722_v46  }
  0x41   : > { %1667 = vset.pattern.permute.xlu2 %v1921_v13 }
  0x47   : > { %1580 = vmatmul.msk.f32.gmra.mxu0 %vm372_vm1, %v357_v18  ;;  %1589 = vmatmul.msk.f32.gmra.mxu3 %vm372_vm1, %v366_v19  ;;  %v918_v19 = vsel %vm917_vm3, %v1930_v16, 0.0 }
  0x48   : > { %1666 = vset.pattern.permute.xlu1 %v1941_v20 }
  0x49   : > { %714 = vperm.xlu2 %1667, %v709_v39  }
  0x4f   : > { %1581 = vmatmul.msk.f32.gmra.mxu0 %vm372_vm1, %v358_v21 }
  0x50   : > { %707 = vperm.xlu1 %1666, %v696_v28  }
  0x51   : > { %727 = vperm.xlu2 %1667, %v722_v46  }
  0x57   : > { %1582 = vmatmul.msk.f32.gmra.mxu0 %vm372_vm1, %v359_v22 }
  0x58   : > { %720 = vperm.xlu1 %1666, %v709_v39  }
  0x59   : > { %1669 = vset.pattern.permute.xlu2 %v1941_v20 }
  0x60   : > { %1668 = vset.pattern.permute.xlu1 %v1921_v13 }
  0x61   : > { %746 = vperm.xlu2 %1669, %v735_v60  }
  0x68   : > { %740 = vperm.xlu1 %1668, %v735_v60  }
  0x7b   : > { %v650_v21 = vpop.permute.xlu2 %649 }
  0x8b   : > { %v656_v27 = vpop.permute.xlu2 %655 }
  0x92   : > { %919 = vadd.xlane.f32.xlu1 %v918_v19  ;;  %v676_v20 = vpop.permute.xlu1 %675 }
  0x94   : > { %v442_v31 = vpop.f32.mrf.mxu0 }
  0x95   : > { %v443_v32 = vadd.f32 %v1966_v30, %v442_v31  ;;  %v663_v31 = vpop.permute.xlu0 %662 }
  0x97   : > { %v490_v33 = vmax.f32 %v443_v32, 0.0 }
  0x99   : > { %1590 = vmatmul.msk.f32.vlgmr.msra.gmra.mxu1 %vm514_vm2, %v490_v33 }
  0x9a   : > { %v469_v34 = vpop.f32.mrf.mxu3 }
  0x9b   : > { %v470_v35 = vadd.f32 %v1966_v30, %v469_v34 }
  0x9c   : > { %v445_v36 = vpop.f32.mrf.mxu0 }
  0x9d   : > { %v499_v37 = vmax.f32 %v470_v35, 0.0  ;;  %v446_v38 = vadd.f32 %v1966_v30, %v445_v36 }
  0x9f   : > { %v491_v40 = vmax.f32 %v446_v38, 0.0  ;;  %1599 = vmatmul.msk.f32.vlgmr.msra.gmra.mxu2 %vm514_vm2, %v499_v37  ;;  %v2028_v38 = vpop.permute.xlu2 %694 }
  0xa1   : > { %1591 = vmatmul.msk.f32.gmra.mxu1 %vm514_vm2, %v491_v40 }
  0xa2   : > { %v472_v41 = vpop.f32.mrf.mxu3  ;;  %v2009_v22 = vpop.permute.xlu1 %681 }
  0xa3   : > { %v473_v42 = vadd.f32 %v1966_v30, %v472_v41 }
  0xa4   : > { %v448_v43 = vpop.f32.mrf.mxu0 }
  0xa5   : > { %v500_v44 = vmax.f32 %v473_v42, 0.0  ;;  %v449_v45 = vadd.f32 %v1966_v30, %v448_v43 }
  0xa7   : > { %v492_v47 = vmax.f32 %v449_v45, 0.0  ;;  %1600 = vmatmul.msk.f32.gmra.mxu2 %vm514_vm2, %v500_v44  ;;  %v2036_v45 = vpop.permute.xlu0 %701 }
  0xa9   : > { %1592 = vmatmul.msk.f32.gmra.mxu1 %vm514_vm2, %v492_v47 }
  0xaa   : > { %v475_v48 = vpop.f32.mrf.mxu3 }
  0xab   : > { %v476_v49 = vadd.f32 %v1966_v30, %v475_v48 }
  0xac   : > { %v451_v50 = vpop.f32.mrf.mxu0 }
  0xad   : > { %v501_v51 = vmax.f32 %v476_v49, 0.0  ;;  %v452_v52 = vadd.f32 %v1966_v30, %v451_v50 }
  0xaf   : > { %v493_v53 = vmax.f32 %v452_v52, 0.0  ;;  %1601 = vmatmul.msk.f32.gmra.mxu2 %vm514_vm2, %v501_v51  ;;  %v715_v51 = vpop.permute.xlu2 %714 }
  0xb1   : > { %1593 = vmatmul.msk.f32.gmra.mxu1 %vm514_vm2, %v493_v53 }
  0xb2   : > { %v478_v54 = vpop.f32.mrf.mxu3  ;;  %v2017_v28 = vpop.permute.xlu1 %688 }
  0xb3   : > { %v479_v55 = vadd.f32 %v1966_v30, %v478_v54 }
  0xb4   : > { %v454_v56 = vpop.f32.mrf.mxu0 }
  0xb5   : > { %v502_v57 = vmax.f32 %v479_v55, 0.0  ;;  %v455_v58 = vadd.f32 %v1966_v30, %v454_v56 }
  0xb7   : > { %v494_v59 = vmax.f32 %v455_v58, 0.0  ;;  %1602 = vmatmul.msk.f32.gmra.mxu2 %vm514_vm2, %v502_v57  ;;  %v669_v57 = vpop.permute.xlu0 %668 }
  0xb9   : > { %1594 = vmatmul.msk.f32.gmra.mxu1 %vm514_vm2, %v494_v59 }
  0xba   : > { %v481_v61 = vpop.f32.mrf.mxu3 }
  0xbb   : > { %v482_v62 = vadd.f32 %v1966_v30, %v481_v61 }
  0xbc   : > { %v457_v63 = vpop.f32.mrf.mxu0 }
  0xbd   : > { %v503_v0 = vmax.f32 %v482_v62, 0.0  ;;  %v458_v1 = vadd.f32 %v1966_v30, %v457_v63 }
  0xbf   : > { %v495_v2 = vmax.f32 %v458_v1, 0.0  ;;  %1603 = vmatmul.msk.f32.gmra.mxu2 %vm514_vm2, %v503_v0 }
  0xc1   : > { %1595 = vmatmul.msk.f32.gmra.mxu1 %vm514_vm2, %v495_v2 }
  0xc2   : > { %v484_v3 = vpop.f32.mrf.mxu3  ;;  %v708_v39 = vpop.permute.xlu1 %707 }
  0xc3   : > { %v485_v4 = vadd.f32 %v1966_v30, %v484_v3 }
  0xc4   : > { %v460_v5 = vpop.f32.mrf.mxu0 }
  0xc5   : > { %v461_v6 = vadd.f32 %v1966_v30, %v460_v5  ;;  %v504_v7 = vmax.f32 %v485_v4, 0.0 }
  0xc7   : > { %v496_v8 = vmax.f32 %v461_v6, 0.0  ;;  %1604 = vmatmul.msk.f32.gmra.mxu2 %vm514_vm2, %v504_v7 }
  0xc9   : > { %1596 = vmatmul.msk.f32.gmra.mxu1 %vm514_vm2, %v496_v8 }
  0xca   : > { %v487_v9 = vpop.f32.mrf.mxu3  ;;  %v721_v1 = vpop.permute.xlu1 %720 }
  0xcb   : > { %v488_v10 = vadd.f32 %v1966_v30, %v487_v9 }
  0xcc   : > { %v463_v11 = vpop.f32.mrf.mxu0 }
  0xcd   : > { %v464_v12 = vadd.f32 %v1966_v30, %v463_v11  ;;  %v505_v13 = vmax.f32 %v488_v10, 0.0 }
  0xcf   : > { %v497_v14 = vmax.f32 %v464_v12, 0.0  ;;  %1605 = vmatmul.msk.f32.gmra.mxu2 %vm514_vm2, %v505_v13  ;;  %v728_v12 = vpop.permute.xlu2 %727 }
  0xd1   : > { %1597 = vmatmul.msk.f32.gmra.mxu1 %vm514_vm2, %v497_v14 }
  0xd4   : > { %v466_v15 = vpop.f32.mrf.mxu0 }
  0xd5   : > { %v467_v17 = vadd.f32 %v1966_v30, %v466_v15 }
  0xd7   : > { %v498_v18 = vmax.f32 %v467_v17, 0.0 }
  0xd9   : > { %1598 = vmatmul.msk.f32.gmra.mxu1 %vm514_vm2, %v498_v18 }
 0x116   : > { %v580_v24 = vpop.f32.mrf.mxu1 }
 0x117   : > { %v581_v25 = vadd.f32 %v2014_v23, %v580_v24 }
 0x119   : > { %v628_v26 = vmax.f32 %v581_v25, 0.0  ;;  %v734_v25 = vpop.permute.xlu0 %733 }
 0x11b   : > { %v2019_v29 = vmul.f32 %v650_v21, %v628_v26 }
 0x11d   : > { %v764_v30 = vmul.f32 %v2019_v29, %v2019_v29 }
 0x11e   : > { %v583_v32 = vpop.f32.mrf.mxu1 }
 0x11f   : > { %v584_v33 = vadd.f32 %v2014_v23, %v583_v32  ;;  %796 = vrot.lane.b32.xlu2 %v764_v30, %s1785_s21 }
 0x121   : > { %v629_v34 = vmax.f32 %v584_v33, 0.0 }
 0x122   : > { %v607_v35 = vpop.f32.mrf.mxu2 }
 0x123   : > { %v2025_v36 = vmul.f32 %v656_v27, %v629_v34  ;;  %v608_v37 = vadd.f32 %v2014_v23, %v607_v35 }
 0x125   : > { %v637_v40 = vmax.f32 %v608_v37, 0.0  ;;  %v765_v41 = vmul.f32 %v2025_v36, %v2025_v36 }
 0x126   : > { %v586_v42 = vpop.f32.mrf.mxu1 }
 0x127   : > { %v587_v43 = vadd.f32 %v2014_v23, %v586_v42  ;;  %798 = vrot.lane.b32.xlu0 %v765_v41, %s1785_s21  ;;  %v2034_v44 = vmul.f32 %v708_v39, %v637_v40 }
 0x129   : > { %v630_v46 = vmax.f32 %v587_v43, 0.0  ;;  %v773_v49 = vmul.f32 %v2034_v44, %v2034_v44 }
 0x12a   : > { %v610_v47 = vpop.f32.mrf.mxu2 }
 0x12b   : > { %v2038_v48 = vmul.f32 %v663_v31, %v630_v46  ;;  %v611_v50 = vadd.f32 %v2014_v23, %v610_v47  ;;  %v741_v46 = vpop.permute.xlu1 %740 }
 0x12d   : > { %v638_v52 = vmax.f32 %v611_v50, 0.0  ;;  %v766_v53 = vmul.f32 %v2038_v48, %v2038_v48 }
 0x12e   : > { %v589_v54 = vpop.f32.mrf.mxu1 }
 0x12f   : > { %v590_v55 = vadd.f32 %v2014_v23, %v589_v54  ;;  %814 = vrot.lane.b32.xlu0 %v773_v49, %s1785_s21  ;;  %800 = vrot.lane.b32.xlu2 %v766_v53, %s1785_s21  ;;  %v2048_v56 = vmul.f32 %v715_v51, %v638_v52 }
 0x131   : > { %v631_v58 = vmax.f32 %v590_v55, 0.0  ;;  %v774_v61 = vmul.f32 %v2048_v56, %v2048_v56 }
 0x132   : > { %v613_v59 = vpop.f32.mrf.mxu2 }
 0x133   : > { %v2050_v60 = vmul.f32 %v669_v57, %v631_v58  ;;  %v614_v62 = vadd.f32 %v2014_v23, %v613_v59  ;;  %v747_v57 = vpop.permute.xlu2 %746 }
 0x135   : > { %v767_v63 = vmul.f32 %v2050_v60, %v2050_v60  ;;  %v639_v0 = vmax.f32 %v614_v62, 0.0 }
 0x136   : > { %v592_v2 = vpop.f32.mrf.mxu1 }
 0x137   : > { %v2057_v3 = vmul.f32 %v721_v1, %v639_v0  ;;  %v593_v4 = vadd.f32 %v2014_v23, %v592_v2  ;;  %802 = vrot.lane.b32.xlu0 %v767_v63, %s1785_s21  ;;  %816 = vrot.lane.b32.xlu2 %v774_v61, %s1785_s21  ;;  %v2124_v63 = vpop.xlane.xlu1 %919 }
 0x138   : > { %v921_v0 = vmax.f32 %v2124_v63, 1.0 }
 0x139   : > { %v632_v5 = vmax.f32 %v593_v4, 0.0  ;;  %v775_v6 = vmul.f32 %v2057_v3, %v2057_v3 }
 0x13a   : > { %v616_v7 = vpop.f32.mrf.mxu2  ;;  %v2127_v2 = vrot.slane %v921_v0, 1  ;;  %1673 = vrcp.f32 %v921_v0  ;;  %vm943_vm4 = vweird.f32 %v921_v0 }
 0x13b   : > { %v2064_v8 = vmul.f32 %v676_v20, %v632_v5  ;;  %v617_v9 = vadd.f32 %v2014_v23, %v616_v7  ;;  %818 = vrot.lane.b32.xlu1 %v775_v6, %s1785_s21  ;;  %v2132_v5 = vrot.slane %v921_v0, 5 }
 0x13c   : > { %1675 = vrcp.f32 %v2127_v2  ;;  %vm958_vm8 = vweird.f32 %v2127_v2 }
 0x13d   : > { %v640_v10 = vmax.f32 %v617_v9, 0.0  ;;  %v768_v11 = vmul.f32 %v2064_v8, %v2064_v8  ;;  %1677 = vrcp.f32 %v2132_v5  ;;  %vm1018_vm12 = vweird.f32 %v2132_v5 }
 0x13e   : > { %v595_v13 = vpop.f32.mrf.mxu1 }
 0x13f   : > { %v2070_v14 = vmul.f32 %v728_v12, %v640_v10  ;;  %v596_v15 = vadd.f32 %v2014_v23, %v595_v13  ;;  %804 = vrot.lane.b32.xlu2 %v768_v11, %s1785_s21  ;;  %v2139_v11 = vrot.slane %v921_v0, 6 }
 0x140   : > { %v1674_v6 = vpop.eup %1673 }
 0x141   : > { %v633_v17 = vmax.f32 %v596_v15, 0.0  ;;  %v776_v18 = vmul.f32 %v2070_v14, %v2070_v14  ;;  %v939_v10 = vmul.f32 %v1674_v6, %v921_v0  ;;  %1679 = vrcp.f32 %v2139_v11 }
 0x142   : > { %v619_v19 = vpop.f32.mrf.mxu2  ;;  %v2137_v9 = vpop.eup %1675  ;;  %vm944_vm5 = vweird.f32 %v1674_v6  ;;  %vm1033_vm3 = vweird.f32 %v2139_v11 }
 0x143   : > { %v620_v20 = vadd.f32 %v2014_v23, %v619_v19  ;;  %820 = vrot.lane.b32.xlu0 %v776_v18, %s1785_s21  ;;  %v2079_v21 = vmul.f32 %v2009_v22, %v633_v17  ;;  %v954_v13 = vmul.f32 %v2137_v9, %v2127_v2  ;;  %v940_v15 = vsub.f32 1.0, %v939_v10  ;;  %v2146_v17 = vpop.eup %1677  ;;  %vm2160_vm7 = vmor %vm943_vm4, %vm944_vm5 }
 0x144   : > { %v2148_v19 = vrot.slane %v921_v0, 4  ;;  %vm959_vm9 = vweird.f32 %v2137_v9  ;;  %vm1019_vm13 = vweird.f32 %v2146_v17 }
 0x145   : > { %v641_v24 = vmax.f32 %v620_v20, 0.0  ;;  %v769_v32 = vmul.f32 %v2079_v21, %v2079_v21  ;;  %v955_v18 = vsub.f32 1.0, %v954_v13  ;;  %v941_v20 = vmul.f32 %v1674_v6, %v940_v15  ;;  %vm2180_vm11 = vmor %vm958_vm8, %vm959_vm9 }
 0x146   : > { %v598_v26 = vpop.f32.mrf.mxu1  ;;  %1681 = vrcp.f32 %v2148_v19  ;;  %v1024_v13 = vand.u32 2147483648, %v2132_v5  ;;  %vm2209_vm15 = vmor %vm1018_vm12, %vm1019_vm13  ;;  %vm1003_vm5 = vweird.f32 %v2148_v19 }
 0x147   : > { %v2081_v27 = vmul.f32 %v734_v25, %v641_v24  ;;  %v599_v30 = vadd.f32 %v2014_v23, %v598_v26  ;;  %v1014_v25 = vmul.f32 %v2146_v17, %v2132_v5  ;;  %v2152_v26 = vpop.eup %1679 }
 0x148   : > { %vm1034_vm4 = vweird.f32 %v2152_v26 }
 0x149   : > { %v634_v31 = vmax.f32 %v599_v30, 0.0  ;;  %v777_v33 = vmul.f32 %v2081_v27, %v2081_v27  ;;  %v2154_v30 = vrot.slane %v921_v0, 2  ;;  %vm2259_vm8 = vmor %vm1033_vm3, %vm1034_vm4  ;;  %vm1070_vm3 = vcmask 1041409  }
 0x14a   : > { %v622_v34 = vpop.f32.mrf.mxu2 }
 0x14b   : > { %806 = vrot.lane.b32.xlu0 %v769_v32, %s1785_s21  ;;  %822 = vrot.lane.b32.xlu2 %v777_v33, %s1785_s21  ;;  %v2091_v22 = vmul.f32 %v2017_v28, %v634_v31  ;;  %v623_v39 = vadd.f32 %v2014_v23, %v622_v34  ;;  %v949_v31 = vand.u32 2147483648, %v921_v0  ;;  %v956_v32 = vmul.f32 %v2137_v9, %v955_v18 }
 0x14c   : > { %v942_v33 = vadd.f32 %v1674_v6, %v941_v20  ;;  %v947_v34 = vand.u32 2147483647, %v921_v0  ;;  %1683 = vrcp.f32 %v2154_v30 }
 0x14d   : > { %v770_v41 = vmul.f32 %v2091_v22, %v2091_v22  ;;  %v642_v43 = vmax.f32 %v623_v39, 0.0 }
 0x14e   : > { %v601_v35 = vpop.f32.mrf.mxu1  ;;  %vm948_vm10 = vcmp.eq.f32.partialorder %v947_v34, 8.507059e+37 }
 0x14f   : > { %v602_v37 = vadd.f32 %v2014_v23, %v601_v35  ;;  %v2105_v51 = vmul.f32 %v741_v46, %v642_v43  ;;  %v1015_v35 = vsub.f32 1.0, %v1014_v25  ;;  %v950_v46 = vor.u32 1.1754944e-38, %v949_v31 }
 0x151   : > { %v635_v40 = vmax.f32 %v602_v37, 0.0  ;;  %v778_v54 = vmul.f32 %v2105_v51, %v2105_v51 }
 0x152   : > { %v625_v47 = vpop.f32.mrf.mxu2 }
 0x153   : > { %v2098_v42 = vmul.f32 %v2028_v38, %v635_v40  ;;  %808 = vrot.lane.b32.xlu2 %v770_v41, %s1785_s21  ;;  %v626_v52 = vadd.f32 %v2014_v23, %v625_v47  ;;  %v964_v40 = vand.u32 2147483648, %v2127_v2  ;;  %v1029_v41 = vmul.f32 %v2152_v26, %v2139_v11 }
 0x154   : > { %v957_v47 = vadd.f32 %v2137_v9, %v956_v32 }
 0x155   : > { %v771_v28 = vmul.f32 %v2098_v42, %v2098_v42  ;;  %v643_v55 = vmax.f32 %v626_v52, 0.0 }
 0x156   : > { %v604_v49 = vpop.f32.mrf.mxu1 }
 0x157   : > { %v605_v50 = vadd.f32 %v2014_v23, %v604_v49  ;;  %810 = vrot.lane.b32.xlu0 %v771_v28, %s1785_s21  ;;  %v2117_v59 = vmul.f32 %v747_v57, %v643_v55  ;;  %v962_v28 = vand.u32 2147483647, %v2127_v2  ;;  %v2185_v55 = vpop.eup %1681 }
 0x158   : > { %v999_v15 = vmul.f32 %v2185_v55, %v2148_v19 }
 0x159   : > { %v636_v53 = vmax.f32 %v605_v50, 0.0  ;;  %v779_v23 = vmul.f32 %v2117_v59, %v2117_v59  ;;  %v946_v50 = vsel %vm2160_vm7, %v1674_v6, %v942_v33  ;;  %v961_v6 = vsel %vm2180_vm11, %v2137_v9, %v957_v47 }
 0x15a   : > { %vm963_vm14 = vcmp.eq.f32.partialorder %v962_v28, 8.507059e+37  ;;  %v1022_v9 = vand.u32 2147483647, %v2132_v5  ;;  %vm1004_vm7 = vweird.f32 %v2185_v55  ;;  %vm973_vm11 = vweird.f32 %v2154_v30 }
 0x15b   : > { %v2109_v38 = vmul.f32 %v2036_v45, %v636_v53  ;;  %vm2282_vm9 = vmor %vm1003_vm5, %vm1004_vm7 }
 0x15c   : > { %vm2234_vm2 = vcmp.eq.f32.partialorder %v1022_v9, 8.507059e+37 }
 0x15d   : > { %v772_v58 = vmul.f32 %v2109_v38, %v2109_v38 }
 0x15f   : > { %824 = vrot.lane.b32.xlu0 %v778_v54, %s1785_s21  ;;  %812 = vrot.lane.b32.xlu2 %v772_v58, %s1785_s21  ;;  %v1030_v58 = vsub.f32 1.0, %v1029_v41  ;;  %v1039_v41 = vand.u32 2147483648, %v2139_v11 }
 0x167   : > { %826 = vrot.lane.b32.xlu2 %v779_v23, %s1785_s21  ;;  %v2189_v23 = vrot.slane %v921_v0, 3 }
 0x169   : > { %1685 = vrcp.f32 %v2189_v23 }
 0x179   : > { %v797_v45 = vpop.permute.xlu2 %796 }
 0x17a   : > { %v845_v43 = vsel %vm2839_vm6, %v2019_v29, %v797_v45  ;;  %v1016_v29 = vmul.f32 %v2146_v17, %v1015_v35  ;;  %v1000_v35 = vsub.f32 1.0, %v999_v15 }
 0x17c   : > { %v1017_v10 = vadd.f32 %v2146_v17, %v1016_v29  ;;  %v1007_v29 = vand.u32 2147483647, %v2148_v19 }
 0x189   : > { %v801_v61 = vpop.permute.xlu2 %800 }
 0x18a   : > { %v847_v57 = vsel %vm2839_vm6, %v2038_v48, %v801_v61  ;;  %v2200_v48 = vpop.eup %1683 }
 0x18b   : > { %v969_v34 = vmul.f32 %v2200_v48, %v2154_v30  ;;  %v2246_v47 = vpop.eup %1685  ;;  %vm974_vm12 = vweird.f32 %v2200_v48 }
 0x18c   : > { %v984_v15 = vmul.f32 %v2246_v47, %v2189_v23  ;;  %vm2306_vm13 = vmor %vm973_vm11, %vm974_vm12  ;;  %vm1073_vm11 = vcmask 1042434   ;;  %vm1076_vm12 = vcmask 1043459  }
 0x191   : > { %v2122_v62 = vpop.permute.xlu2 %816 }
 0x192   : > { %v855_v61 = vsel %vm2839_vm6, %v2048_v56, %v2122_v62 }
 0x199   : > { %v799_v1 = vpop.permute.xlu0 %798  ;;  %v2129_v4 = vpop.permute.xlu2 %804 }
 0x19a   : > { %v846_v52 = vsel %vm2839_vm6, %v2025_v36, %v799_v1  ;;  %v2193_v36 = vrot.slane %v921_v0, 7  ;;  %v2195_v1 = vsel %vm948_vm10, %v950_v46, %v946_v50  ;;  %vm2286_vm10 = vcmp.eq.f32.partialorder %v1007_v29, 8.507059e+37 }
 0x19b   : > { %v861_v2 = vadd.f32 %v846_v52, %v845_v43  ;;  %v1001_v52 = vmul.f32 %v2185_v55, %v1000_v35 }
 0x19c   : > { %1687 = vrcp.f32 %v2193_v36 }
 0x19d   : > { %v862_v32 = vrot.slane %v861_v2, 4 }
 0x19f   : > { %v863_v28 = vadd.f32 %v862_v32, %v861_v2 }
 0x1a1   : > { %v2134_v7 = vpop.permute.xlu0 %814 }
 0x1a2   : > { %v854_v62 = vsel %vm2839_vm6, %v2034_v44, %v2134_v7  ;;  %v1021_v44 = vsel %vm2209_vm15, %v2146_v17, %v1017_v10  ;;  %v1025_v7 = vor.u32 1.1754944e-38, %v1024_v13  ;;  %v2250_v50 = vpop.eup %1687  ;;  %v2269_v10 = vor.u32 1.1754944e-38, %v1039_v41 }
 0x1a3   : > { %v1002_v13 = vadd.f32 %v2185_v55, %v1001_v52 }
 0x1a4   : > { %v2266_v2 = vsel %vm2234_vm2, %v1025_v7, %v1021_v44  ;;  %v985_v44 = vsub.f32 1.0, %v984_v15  ;;  %vm989_vm2 = vweird.f32 %v2246_v47 }
 0x1a5   : > { %v2141_v12 = vpop.permute.xlu2 %822 }
 0x1a9   : > { %v803_v24 = vpop.permute.xlu0 %802 }
 0x1aa   : > { %v848_v49 = vsel %vm2839_vm6, %v2050_v60, %v803_v24  ;;  %v965_v60 = vor.u32 1.1754944e-38, %v964_v40  ;;  %v1031_v24 = vmul.f32 %v2152_v26, %v1030_v58 }
 0x1ab   : > { %v868_v45 = vadd.f32 %v848_v49, %v847_v57 }
 0x1ac   : > { %v2221_v25 = vsel %vm963_vm14, %v965_v60, %v961_v6  ;;  %v1037_v6 = vand.u32 2147483647, %v2139_v11  ;;  %vm988_vm14 = vweird.f32 %v2189_v23 }
 0x1ad   : > { %v2158_v37 = vpop.permute.xlu2 %808  ;;  %v819_v0 = vpop.permute.xlu1 %818  ;;  %v869_v31 = vrot.slane %v868_v45, 4  ;;  %vm2339_vm5 = vmor %vm988_vm14, %vm989_vm2  ;;  %vm1085_vm2 = vcmask 1046534  }
 0x1ae   : > { %v856_v5 = vsel %vm2839_vm6, %v2057_v3, %v819_v0  ;;  %v2239_v3 = vadd.f32 %v2152_v26, %v1031_v24  ;;  %v851_v35 = vsel %vm2839_vm6, %v2091_v22, %v2158_v37  ;;  %vm2328_vm4 = vcmp.eq.f32.partialorder %v1037_v6, 8.507059e+37 }
 0x1b5   : > { %v821_v54 = vpop.permute.xlu0 %820 }
 0x1b6   : > { %v857_v17 = vsel %vm2839_vm6, %v2070_v14, %v821_v54  ;;  %v970_v54 = vsub.f32 1.0, %v969_v34  ;;  %v977_v34 = vand.u32 2147483647, %v2154_v30 }
 0x1b8   : > { %v971_v24 = vmul.f32 %v2200_v48, %v970_v54  ;;  %vm978_vm15 = vcmp.eq.f32.partialorder %v977_v34, 8.507059e+37 }
 0x1b9   : > { %v813_v18 = vpop.permute.xlu2 %812 }
 0x1ba   : > { %v853_v56 = vsel %vm2839_vm6, %v2109_v38, %v813_v18  ;;  %v849_v38 = vsel %vm2839_vm6, %v2064_v8, %v2129_v4  ;;  %v870_v8 = vadd.f32 %v869_v31, %v868_v45  ;;  %v896_v4 = vadd.f32 %v856_v5, %v855_v61 }
 0x1bb   : > { %v889_v33 = vadd.f32 %v854_v62, %v853_v56  ;;  %v1009_v45 = vand.u32 2147483648, %v2148_v19  ;;  %v1036_v18 = vsel %vm2259_vm8, %v2152_v26, %v2239_v3  ;;  %v972_v40 = vadd.f32 %v2200_v48, %v971_v24 }
 0x1bc   : > { %v871_v57 = vrot.slane %v870_v8, 2  ;;  %v897_v60 = vrot.slane %v896_v4, 4  ;;  %vm1082_vm8 = vcmask 1045509  }
 0x1bd   : > { %v807_v39 = vpop.permute.xlu0 %806  ;;  %v890_v49 = vrot.slane %v889_v33, 4  ;;  %v1010_v31 = vor.u32 1.1754944e-38, %v1009_v45  ;;  %v976_v52 = vsel %vm2306_vm13, %v2200_v48, %v972_v40  ;;  %vm1079_vm13 = vcmask 1044484  }
 0x1be   : > { %v850_v43 = vsel %vm2839_vm6, %v2079_v21, %v807_v39  ;;  %v858_v21 = vsel %vm2839_vm6, %v2081_v27, %v2141_v12  ;;  %v864_v12 = vrot.slane %v863_v28, 2  ;;  %v872_v56 = vadd.f32 %v871_v57, %v870_v8 }
 0x1bf   : > { %v875_v46 = vadd.f32 %v850_v43, %v849_v38  ;;  %v903_v53 = vadd.f32 %v858_v21, %v857_v17  ;;  %v891_v61 = vadd.f32 %v890_v49, %v889_v33  ;;  %v898_v62 = vadd.f32 %v897_v60, %v896_v4 }
 0x1c0   : > { %v865_v32 = vadd.f32 %v864_v12, %v863_v28  ;;  %v1006_v33 = vsel %vm2282_vm9, %v2185_v55, %v1002_v13  ;;  %v979_v38 = vand.u32 2147483648, %v2154_v30  ;;  %v873_v43 = vrot.slane %v872_v56, 1 }
 0x1c1   : > { %v876_v14 = vrot.slane %v875_v46, 4  ;;  %v904_v20 = vrot.slane %v903_v53, 4  ;;  %v892_v5 = vrot.slane %v891_v61, 2  ;;  %v899_v8 = vrot.slane %v898_v62, 2  ;;  %v827_v54 = vpop.permute.xlu2 %826 }
 0x1c2   : > { %v866_v17 = vrot.slane %v865_v32, 1  ;;  %v1011_v22 = vsel %vm2286_vm10, %v1010_v31, %v1006_v33  ;;  %v980_v28 = vor.u32 1.1754944e-38, %v979_v38  ;;  %v1044_v30 = vmul.f32 %v2250_v50, %v2193_v36 }
 0x1c3   : > { %v877_v27 = vadd.f32 %v876_v14, %v875_v46  ;;  %v905_v39 = vadd.f32 %v904_v20, %v903_v53  ;;  %v893_v37 = vadd.f32 %v892_v5, %v891_v61  ;;  %v992_v14 = vand.u32 2147483647, %v2189_v23 }
 0x1c4   : > { %v2320_v53 = vadd.f32 %v873_v43, %v872_v56  ;;  %v900_v29 = vadd.f32 %v899_v8, %v898_v62  ;;  %v2323_v60 = vadd.f32 %v866_v17, %v865_v32  ;;  %v994_v12 = vand.u32 2147483648, %v2189_v23 }
 0x1c5   : > { %v878_v0 = vrot.slane %v877_v27, 2  ;;  %v906_v21 = vrot.slane %v905_v39, 2  ;;  %v894_v45 = vrot.slane %v893_v37, 1  ;;  %v981_v61 = vsel %vm978_vm15, %v980_v28, %v976_v52 }
 0x1c6   : > { %v1045_v15 = vsub.f32 1.0, %v1044_v30  ;;  %v860_v9 = vsel %vm2839_vm6, %v2117_v59, %v827_v54  ;;  %vm2343_vm7 = vcmp.eq.f32.partialorder %v992_v14, 8.507059e+37  ;;  %v967_v62 = vmul.f32 %v2221_v25, %v2320_v53 }
 0x1c7   : > { %v879_v19 = vadd.f32 %v878_v0, %v877_v27  ;;  %v907_v11 = vadd.f32 %v906_v21, %v905_v39  ;;  %v901_v31 = vrot.slane %v900_v29, 1  ;;  %v2351_v5 = vadd.f32 %v894_v45, %v893_v37 }
 0x1c8   : > { %vm1048_vm9 = vweird.f32 %v2193_v36  ;;  %v952_v25 = vmul.f32 %v2195_v1, %v2323_v60  ;;  %vm1049_vm10 = vweird.f32 %v2250_v50  ;;  %v1054_v55 = vand.u32 2147483648, %v2193_v36 }
 0x1c9   : > { %v811_v7 = vpop.permute.xlu0 %810  ;;  %v880_v46 = vrot.slane %v879_v19, 1  ;;  %v2363_v39 = vadd.f32 %v901_v31, %v900_v29  ;;  %vm2379_vm14 = vmor %vm1048_vm9, %vm1049_vm10 }
 0x1ca   : > { %v852_v41 = vsel %vm2839_vm6, %v2098_v42, %v811_v7  ;;  %v986_v42 = vmul.f32 %v2246_v47, %v985_v44  ;;  %v908_v44 = vrot.slane %v907_v11, 1  ;;  %v1052_v7 = vand.u32 2147483647, %v2193_v36 }
 0x1cb   : > { %v882_v4 = vadd.f32 %v852_v41, %v851_v35  ;;  %v2325_v27 = vadd.f32 %v880_v46, %v879_v19  ;;  %v995_v19 = vor.u32 1.1754944e-38, %v994_v12  ;;  %v1069_v35 = vrot.slane %v967_v62, 7 }
 0x1cc   : > { %v987_v13 = vadd.f32 %v2246_v47, %v986_v42  ;;  %v2373_v37 = vadd.f32 %v908_v44, %v907_v11  ;;  %v1027_v28 = vmul.f32 %v2266_v2, %v2363_v39  ;;  %v1041_v36 = vsel %vm2328_vm4, %v2269_v10, %v1036_v18 }
 0x1cd   : > { %v883_v49 = vrot.slane %v882_v4, 4  ;;  %v982_v23 = vmul.f32 %v981_v61, %v2325_v27  ;;  %v1071_v46 = vsel %vm1070_vm3, %v1069_v35, %v952_v25  ;;  %v1055_v52 = vor.u32 1.1754944e-38, %v1054_v55 }
 0x1ce   : > { %v991_v33 = vsel %vm2339_vm5, %v2246_v47, %v987_v13  ;;  %v1012_v47 = vmul.f32 %v1011_v22, %v2351_v5  ;;  %vm1053_vm15 = vcmp.eq.f32.partialorder %v1052_v7, 8.507059e+37  ;;  %v1042_v58 = vmul.f32 %v1041_v36, %v2373_v37  ;;  %v1419_v22 = vld [vmem:[%s2835_s6 + $0x68] sm:$0xff] }
 0x1cf   : > { %v884_v57 = vadd.f32 %v883_v49, %v882_v4  ;;  %v1072_v43 = vrot.slane %v982_v23, 6  ;;  %v996_v8 = vsel %vm2343_vm7, %v995_v19, %v991_v33  ;;  %v1081_v3 = vrot.slane %v1027_v28, 3 }
 0x1d0   : > { %v1078_v30 = vrot.slane %v1012_v47, 4  ;;  %v1084_v45 = vrot.slane %v1042_v58, 2  ;;  %vm1088_vm4 = vcmask 1047559   ;;  %vm1058_vm5 = vcmp.eq.f32.partialorder %v2124_v63, 1.0 }
 0x1d1   : > { %v885_v0 = vrot.slane %v884_v57, 2  ;;  %v825_v20 = vpop.permute.xlu0 %824  ;;  %v1074_v21 = vsel %vm1073_vm11, %v1072_v43, %v1071_v46 }
 0x1d2   : > { %v859_v56 = vsel %vm2839_vm6, %v2105_v51, %v825_v20  ;;  %v1046_v51 = vmul.f32 %v2250_v50, %v1045_v15 }
 0x1d3   : > { %v886_v59 = vadd.f32 %v885_v0, %v884_v57  ;;  %v910_v32 = vadd.f32 %v860_v9, %v859_v56  ;;  %v1059_v56 = vsel %vm1058_vm5, 2.0, %v2124_v63 }
 0x1d4   : > { %v1047_v4 = vadd.f32 %v2250_v50, %v1046_v51  ;;  %v1060_v62 = vmax.f32 %v1059_v56, 2.0 }
 0x1d5   : > { %v887_v34 = vrot.slane %v886_v59, 1  ;;  %v911_v38 = vrot.slane %v910_v32, 4 }
 0x1d6   : > { %v1051_v2 = vsel %vm2379_vm14, %v2250_v50, %v1047_v4  ;;  %v2423_v31 = vadd.f32 -1.0, %v1060_v62 }
 0x1d7   : > { %v2365_v40 = vadd.f32 %v887_v34, %v886_v59  ;;  %v912_v41 = vadd.f32 %v911_v38, %v910_v32  ;;  %v1056_v10 = vsel %vm1053_vm15, %v1055_v52, %v1051_v2  ;;  %v1421_v34 = vld [vmem:[%s2835_s6 + $0x78] sm:$0xff] }
 0x1d8   : > { %v1144_v59 = vrot.slane %v2423_v31, 2  ;;  %v1146_v32 = vrot.slane %v2423_v31, 4  ;;  %1451 = vmatpush.msrb.mxu3 %v1421_v34  ;;  %v2443_v25 = vrot.slane %v2423_v31, 1  ;;  %v2462_v46 = vrot.slane %v2423_v31, 3 }
 0x1d9   : > { %v997_v1 = vmul.f32 %v996_v8, %v2365_v40  ;;  %v913_v17 = vrot.slane %v912_v41, 2 }
 0x1da   : > { %1689 = vrcp.f32 %v1144_v59  ;;  %vm1193_vm7 = vweird.f32 %v1144_v59  ;;  %v1199_v55 = vand.u32 2147483648, %v1144_v59  ;;  %vm1223_vm14 = vweird.f32 %v1146_v32 }
 0x1db   : > { %v1075_v42 = vrot.slane %v997_v1, 5  ;;  %v914_v49 = vadd.f32 %v913_v17, %v912_v41  ;;  %1691 = vrcp.f32 %v1146_v32  ;;  %v1197_v41 = vand.u32 2147483647, %v1144_v59 }
 0x1dc   : > { %v2455_v17 = vrot.slane %v2423_v31, 5  ;;  %v1200_v36 = vor.u32 1.1754944e-38, %v1199_v55  ;;  %v1227_v2 = vand.u32 2147483647, %v1146_v32 }
 0x1dd   : > { %v1077_v14 = vsel %vm1076_vm12, %v1075_v42, %v1074_v21  ;;  %v915_v29 = vrot.slane %v914_v49, 1  ;;  %vm2464_vm10 = vcmp.eq.f32.partialorder %v1197_v41, 8.507059e+37 }
 0x1de   : > { %v1080_v26 = vsel %vm1079_vm13, %v1078_v30, %v1077_v14 }
 0x1df   : > { %v2401_v54 = vadd.f32 %v915_v29, %v914_v49  ;;  %v1083_v57 = vsel %vm1082_vm8, %v1081_v3, %v1080_v26  ;;  %v1229_v29 = vand.u32 2147483648, %v1146_v32 }
 0x1e0   : > { %v1086_v50 = vsel %vm1085_vm2, %v1084_v45, %v1083_v57  ;;  %v1690_v23 = vpop.eup %1689 }
 0x1e1   : > { %v1057_v18 = vmul.f32 %v1056_v10, %v2401_v54  ;;  %v1189_v19 = vmul.f32 %v1690_v23, %v1144_v59  ;;  %v2432_v33 = vpop.eup %1691  ;;  %vm1194_vm9 = vweird.f32 %v1690_v23 }
 0x1e2   : > { %v1219_v38 = vmul.f32 %v2432_v33, %v1146_v32  ;;  %vm1224_vm15 = vweird.f32 %v2432_v33 }
 0x1e3   : > { %v1087_v12 = vrot.slane %v1057_v18, 1  ;;  %v1190_v51 = vsub.f32 1.0, %v1189_v19  ;;  %vm2481_vm5 = vmor %vm1223_vm14, %vm1224_vm15  ;;  %v1167_v19 = vand.u32 2147483647, %v2423_v31 }
 0x1e4   : > { %v1220_v43 = vsub.f32 1.0, %v1219_v38 }
 0x1e5   : > { %v2407_v48 = vsel %vm1088_vm4, %v1087_v12, %v1086_v50  ;;  %v1191_v35 = vmul.f32 %v1690_v23, %v1190_v51  ;;  %v1242_v12 = vand.u32 2147483647, %v2455_v17 }
 0x1e6   : > { %v1091_v61 = vmul.f32 %v2407_v48, %v2124_v63  ;;  %v1422_v63 = vld [vmem:[%s2836_s7] sm:$0xf]  ;;  %v1221_v42 = vmul.f32 %v2432_v33, %v1220_v43 }
 0x1e7   : > { %1607 = vmatpush.msk.msrb.mxu2 %vm421_vm0, %v1422_v63  ;;  %v1192_v4 = vadd.f32 %v1690_v23, %v1191_v35  ;;  %vm2457_vm0 = vmor %vm1193_vm7, %vm1194_vm9  ;;  %vm2488_vm7 = vcmp.eq.f32.partialorder %v1227_v2, 8.507059e+37 }
 0x1e8   : > { %v1092_v13 = vmul.f32 %v1091_v61, %v2407_v48  ;;  %v1222_v58 = vadd.f32 %v2432_v33, %v1221_v42  ;;  %v1420_v61 = vld [vmem:[%s2835_s6 + $0x70] sm:$0xff] }
 0x1e9   : > { %v1196_v14 = vsel %vm2457_vm0, %v1690_v23, %v1192_v4  ;;  %1452 = vmatpush.msrb.mxu3 %v1420_v61  ;;  %v1182_v4 = vand.u32 2147483647, %v2443_v25  ;;  %v1415_v61 = vld [vmem:[%s2835_s6 + $0x48] sm:$0xff] }
 0x1ea   : > { %1101 = vrot.lane.b32.xlu1 %v1092_v13, %s1785_s21  ;;  %v1095_v0 = vrot.slane %v1092_v13, 2  ;;  %v1094_v15 = vrot.slane %v1092_v13, 1  ;;  %v1098_v20 = vrot.slane %v1092_v13, 5  ;;  %v1097_v11 = vrot.slane %v1092_v13, 4 }
 0x1eb   : > { %v1096_v9 = vrot.slane %v1092_v13, 3  ;;  %v1100_v24 = vrot.slane %v1092_v13, 7  ;;  %v1099_v6 = vrot.slane %v1092_v13, 6  ;;  %v1201_v3 = vsel %vm2464_vm10, %v1200_v36, %v1196_v14  ;;  %1453 = vmatpush.msrb.mxu3 %v1419_v22  ;;  %v1417_v36 = vld [vmem:[%s2835_s6 + $0x58] sm:$0xff] }
 0x1ec   : > { %1105 = vrot.lane.b32.xlu2 %v1095_v0, %s1785_s21  ;;  %1103 = vrot.lane.b32.xlu0 %v1094_v15, %s1785_s21  ;;  %v1230_v13 = vor.u32 1.1754944e-38, %v1229_v29  ;;  %vm1163_vm10 = vweird.f32 %v2423_v31 }
 0x1f2   : > { %1111 = vrot.lane.b32.xlu1 %v1098_v20, %s1785_s21 }
 0x1f4   : > { %1109 = vrot.lane.b32.xlu2 %v1097_v11, %s1785_s21  ;;  %1107 = vrot.lane.b32.xlu0 %v1096_v9, %s1785_s21  ;;  %v2509_v9 = vrot.slane %v2423_v31, 6 }
 0x1fa   : > { %1424 = vrot.lane.b32.xlu1 %v1930_v16, %s1786_s22  ;;  %v2428_v16 = vrot.slane %v2423_v31, 7 }
 0x1fc   : > { %1115 = vrot.lane.b32.xlu2 %v1100_v24, %s1785_s21  ;;  %1113 = vrot.lane.b32.xlu0 %v1099_v6, %s1785_s21  ;;  %1693 = vrcp.f32 %v2428_v16  ;;  %vm1268_vm9 = vweird.f32 %v2428_v16  ;;  %v1272_v0 = vand.u32 2147483647, %v2428_v16  ;;  %v1274_v11 = vand.u32 2147483648, %v2428_v16  ;;  %s337_s21 = sand.u32 1, %s1775_s10  }
 0x1fd   : > { %1695 = vrcp.f32 %v2423_v31  ;;  %s1569_s22 = sshll.u32 %s337_s21, 3  ;;  %s1479_s13 = scalar_lea.sflag [#allocation3], %s337_s21 }
 0x1fe   : > { %1697 = vrcp.f32 %v2443_v25  ;;  %vm2528_vm6 = vcmp.eq.f32.partialorder %v1272_v0, 8.507059e+37  ;;  %v1275_v38 = vor.u32 1.1754944e-38, %v1274_v11  ;;  %v1414_v11 = vld [vmem:[%s2835_s6 + $0x40] sm:$0xff]  ;;  %s339_s27 = scalar_lea.vmem [#allocation2], %s1569_s22 }
 0x1ff   : > { %1699 = vrcp.f32 %v2455_v17  ;;  %s1491_s14 = sshll.u32 %s339_s27, 4  ;;  %s1492_s14 = int_to_ptr.vmem [resolvable:$true] %s1491_s14 }
 0x200   : > { %1701 = vrcp.f32 %v2462_v46 }
 0x201   : > { %1703 = vrcp.f32 %v2509_v9 }
 0x202   : > { %v2445_v44 = vpop.eup %1693 }
 0x203   : > { %v2447_v7 = vpop.eup %1695  ;;  %v1264_v8 = vmul.f32 %v2445_v44, %v2428_v16  ;;  %vm1269_vm0 = vweird.f32 %v2445_v44 }
 0x204   : > { %v1159_v1 = vmul.f32 %v2447_v7, %v2423_v31  ;;  %v2470_v52 = vpop.eup %1697  ;;  %vm1164_vm14 = vweird.f32 %v2447_v7  ;;  %vm2515_vm15 = vmor %vm1268_vm9, %vm1269_vm0  ;;  %vm1178_vm9 = vweird.f32 %v2443_v25 }
 0x205   : > { %v1265_v49 = vsub.f32 1.0, %v1264_v8  ;;  %v1174_v45 = vmul.f32 %v2470_v52, %v2443_v25  ;;  %v2501_v15 = vpop.eup %1699  ;;  %vm1179_vm0 = vweird.f32 %v2470_v52 }
 0x206   : > { %v1160_v21 = vsub.f32 1.0, %v1159_v1  ;;  %v2511_v24 = vpop.eup %1701  ;;  %v1234_v34 = vmul.f32 %v2501_v15, %v2455_v17 }
 0x207   : > { %v1175_v59 = vsub.f32 1.0, %v1174_v45  ;;  %v1204_v41 = vmul.f32 %v2511_v24, %v2462_v46 }
 0x208   : > { %v1161_v57 = vmul.f32 %v2447_v7, %v1160_v21  ;;  %v1235_v28 = vsub.f32 1.0, %v1234_v34  ;;  %v2566_v21 = vpop.eup %1703 }
 0x209   : > { %v1176_v8 = vmul.f32 %v2470_v52, %v1175_v59 }
 0x20a   : > { %v1162_v62 = vadd.f32 %v2447_v7, %v1161_v57  ;;  %v1236_v57 = vmul.f32 %v2501_v15, %v1235_v28 }
 0x20c   : > { %v1237_v56 = vadd.f32 %v2501_v15, %v1236_v57 }
 0x246   : > { %v1106_v47 = vpop.permute.xlu2 %1105 }
 0x247   : > { %v1127_v30 = vsub.f32 %v2325_v27, %v1106_v47  ;;  %v1266_v27 = vmul.f32 %v2445_v44, %v1265_v49  ;;  %v1205_v49 = vsub.f32 1.0, %v1204_v41 }
 0x249   : > { %v1135_v10 = vmax.f32 %v1127_v30, 0.0  ;;  %v1267_v20 = vadd.f32 %v2445_v44, %v1266_v27  ;;  %v1177_v30 = vadd.f32 %v2470_v52, %v1176_v8 }
 0x24b   : > { %v1202_v6 = vmul.f32 %v1201_v3, %v1135_v10  ;;  %v1271_v51 = vsel %vm2515_vm15, %v2445_v44, %v1267_v20  ;;  %v1416_v3 = vld [vmem:[%s2835_s6 + $0x50] sm:$0xff]  ;;  %vm1239_vm15 = vweird.f32 %v2501_v15  ;;  %v1244_v20 = vand.u32 2147483648, %v2455_v17 }
 0x24c   : > { %v1276_v2 = vsel %vm2528_vm6, %v1275_v38, %v1271_v51  ;;  %vm1238_vm6 = vweird.f32 %v2455_v17 }
 0x24d   : > { %v1245_v41 = vor.u32 1.1754944e-38, %v1244_v20 }
 0x24e   : > { %v1110_v26 = vpop.permute.xlu2 %1109 }
 0x24f   : > { %v1129_v50 = vsub.f32 %v2351_v5, %v1110_v26  ;;  %v1226_v5 = vsel %vm2481_vm5, %v2432_v33, %v1222_v58  ;;  %vm2520_vm5 = vmor %vm1163_vm10, %vm1164_vm14  ;;  %v1169_v33 = vand.u32 2147483648, %v2423_v31  ;;  %v2540_v31 = vadd.f32 1e-31, %v1202_v6  ;;  %v1409_v26 = vld [vmem:[%s2835_s6 + $0x18] sm:$0xff] }
 0x250   : > { %v1231_v63 = vsel %vm2488_vm7, %v1230_v13, %v1226_v5  ;;  %v1166_v43 = vsel %vm2520_vm5, %v2447_v7, %v1162_v62  ;;  %vm2547_vm7 = vcmp.eq.f32.partialorder %v1167_v19, 8.507059e+37  ;;  %v1184_v7 = vand.u32 2147483648, %v2443_v25  ;;  %vm2578_vm10 = vmor %vm1178_vm9, %vm1179_vm0 }
 0x251   : > { %v1137_v32 = vmax.f32 %v1129_v50, 0.0  ;;  %v1170_v1 = vor.u32 1.1754944e-38, %v1169_v33  ;;  %1705 = vrsqrt.f32 %v2540_v31  ;;  %vm2582_vm14 = vcmp.eq.f32.partialorder %v1182_v4, 8.507059e+37  ;;  %vm2623_vm9 = vmor %vm1238_vm6, %vm1239_vm15 }
 0x252   : > { %v1185_v18 = vor.u32 1.1754944e-38, %v1184_v7  ;;  %v1206_v50 = vmul.f32 %v2511_v24, %v1205_v49  ;;  %v1249_v5 = vmul.f32 %v2566_v21, %v2509_v9  ;;  %vm1208_vm5 = vweird.f32 %v2462_v46  ;;  %v1410_v49 = vld [vmem:[%s2835_s6 + $0x20] sm:$0xff] }
 0x253   : > { %v1232_v55 = vmul.f32 %v1231_v63, %v1137_v32  ;;  %v1171_v29 = vsel %vm2547_vm7, %v1170_v1, %v1166_v43  ;;  %vm1209_vm7 = vweird.f32 %v2511_v24  ;;  %v1212_v62 = vand.u32 2147483647, %v2462_v46  ;;  %v1413_v63 = vld [vmem:[%s2835_s6 + $0x38] sm:$0xff]  ;;  %v1412_v43 = vld [vmem:[%s2835_s6 + $0x30] sm:$0xff] }
 0x254   : > { %v1207_v19 = vadd.f32 %v2511_v24, %v1206_v50  ;;  %v1214_v33 = vand.u32 2147483648, %v2462_v46  ;;  %vm2638_vm0 = vmor %vm1208_vm5, %vm1209_vm7  ;;  %v1250_v51 = vsub.f32 1.0, %v1249_v5  ;;  %v1241_v8 = vsel %vm2623_vm9, %v2501_v15, %v1237_v56  ;;  %v1411_v15 = vld [vmem:[%s2835_s6 + $0x28] sm:$0xff]  ;;  %v1408_v50 = vld [vmem:[%s2835_s6 + $0x10] sm:$0xff] }
 0x255   : > { %v2568_v14 = vadd.f32 1e-31, %v1232_v55  ;;  %vm1253_vm6 = vweird.f32 %v2509_v9  ;;  %vm1254_vm15 = vweird.f32 %v2566_v21 }
 0x256   : > { %v1116_v35 = vpop.permute.xlu2 %1115  ;;  %v1211_v1 = vsel %vm2638_vm0, %v2511_v24, %v1207_v19  ;;  %v1215_v22 = vor.u32 1.1754944e-38, %v1214_v33  ;;  %v1251_v28 = vmul.f32 %v2566_v21, %v1250_v51  ;;  %vm2699_vm5 = vmor %vm1253_vm6, %vm1254_vm15  ;;  %v1406_v33 = vld [vmem:[%s2835_s6] sm:$0xff]  ;;  %vm1317_vm0 = vcmp.eq.f32.partialorder %v2540_v31, inf }
 0x257   : > { %v1132_v47 = vsub.f32 %v2401_v54, %v1116_v35  ;;  %v1418_v54 = vld [vmem:[%s2835_s6 + $0x60] sm:$0xff]  ;;  %1707 = vrsqrt.f32 %v2568_v14  ;;  %v2611_v6 = vpop.eup %1705  ;;  %vm1343_vm15 = vcmp.eq.f32.partialorder %v2568_v14, 0.0 }
 0x258   : > { %1454 = vmatpush.msrb.mxu3 %v1418_v54  ;;  %v1311_v38 = vmul.f32 %v2611_v6, %v2540_v31 }
 0x259   : > { %v1140_v42 = vmax.f32 %v1132_v47, 0.0 }
 0x25a   : > { %1455 = vmatpush.msrb.mxu3 %v1417_v36  ;;  %v1312_v24 = vmul.f32 %v2611_v6, %v1311_v38 }
 0x25b   : > { %v1277_v25 = vmul.f32 %v1276_v2, %v1140_v42 }
 0x25c   : > { %v1102_v58 = vpop.permute.xlu1 %1101  ;;  %1456 = vmatpush.msrb.mxu3 %v1416_v3 }
 0x25d   : > { %v1125_v10 = vsub.f32 %v2323_v60, %v1102_v58  ;;  %v1181_v60 = vsel %vm2578_vm10, %v2470_v52, %v1177_v30  ;;  %v2615_v59 = vadd.f32 1e-31, %v1277_v25  ;;  %vm2644_vm10 = vcmp.eq.f32.partialorder %v1242_v12, 8.507059e+37  ;;  %v2658_v44 = vpop.eup %1707 }
 0x25e   : > { %v1104_v45 = vpop.permute.xlu0 %1103  ;;  %1457 = vmatpush.msrb.mxu3 %v1415_v61  ;;  %v1186_v32 = vsel %vm2582_vm14, %v1185_v18, %v1181_v60  ;;  %vm2664_vm14 = vcmp.eq.f32.partialorder %v1212_v62, 8.507059e+37  ;;  %v1246_v42 = vsel %vm2644_vm10, %v1245_v41, %v1241_v8  ;;  %v1335_v36 = vmul.f32 %v2658_v44, %v2568_v14 }
 0x25f   : > { %v1133_v13 = vmax.f32 %v1125_v10, 0.0  ;;  %v1126_v0 = vsub.f32 %v2320_v53, %v1104_v45  ;;  %v1259_v58 = vand.u32 2147483648, %v2509_v9  ;;  %v1252_v18 = vadd.f32 %v2566_v21, %v1251_v28 }
 0x260   : > { %1458 = vmatpush.msrb.mxu3 %v1414_v11  ;;  %v1313_v25 = vmul.f32 0.5, %v1312_v24  ;;  %vm1319_vm10 = vcmp.eq.f32.partialorder %v2540_v31, 0.0 }
 0x261   : > { %v1172_v52 = vmul.f32 %v1171_v29, %v1133_v13  ;;  %v1134_v53 = vmax.f32 %v1126_v0, 0.0  ;;  %v1257_v29 = vand.u32 2147483647, %v2509_v9  ;;  %v1336_v0 = vmul.f32 %v2658_v44, %v1335_v36 }
 0x262   : > { %1459 = vmatpush.msrb.mxu3 %v1413_v63  ;;  %v1260_v11 = vor.u32 1.1754944e-38, %v1259_v58  ;;  %v1256_v56 = vsel %vm2699_vm5, %v2566_v21, %v1252_v18  ;;  %v1314_v63 = vsub.f32 1.5, %v1313_v25  ;;  %v1320_v18 = vand.u32 2147483648, %v2540_v31 }
 0x263   : > { %v2632_v16 = vadd.f32 1e-31, %v1172_v52  ;;  %v1187_v34 = vmul.f32 %v1186_v32, %v1134_v53  ;;  %vm2712_vm7 = vcmp.eq.f32.partialorder %v1257_v29, 8.507059e+37  ;;  %v1407_v53 = vld [vmem:[%s2835_s6 + $0x8] sm:$0xff]  ;;  %v1337_v17 = vmul.f32 0.5, %v1336_v0 }
 0x264   : > { %v1112_v47 = vpop.permute.xlu1 %1111  ;;  %1460 = vmatpush.msrb.mxu3 %v1412_v43  ;;  %v1261_v21 = vsel %vm2712_vm7, %v1260_v11, %v1256_v56  ;;  %v1315_v43 = vmul.f32 %v2611_v6, %v1314_v63 }
 0x265   : > { %1709 = vrsqrt.f32 %v2632_v16  ;;  %v2652_v46 = vadd.f32 1e-31, %v1187_v34  ;;  %v1130_v55 = vsub.f32 %v2363_v39, %v1112_v47  ;;  %v1338_v4 = vsub.f32 1.5, %v1337_v17 }
 0x266   : > { %1711 = vrsqrt.f32 %v2615_v59  ;;  %v1108_v54 = vpop.permute.xlu0 %1107  ;;  %1461 = vmatpush.msrb.mxu3 %v1411_v15  ;;  %v1316_v24 = vmul.f32 %v1315_v43, %v2540_v31  ;;  %vm1293_vm6 = vcmp.eq.f32.partialorder %v2632_v16, inf  ;;  %vm1295_vm5 = vcmp.eq.f32.partialorder %v2632_v16, 0.0 }
 0x267   : > { %1713 = vrsqrt.f32 %v2652_v46  ;;  %v1138_v39 = vmax.f32 %v1130_v55, 0.0  ;;  %v1128_v7 = vsub.f32 %v2365_v40, %v1108_v54  ;;  %v1216_v40 = vsel %vm2664_vm14, %v1215_v22, %v1211_v1 }
 0x268   : > { %1462 = vmatpush.msrb.mxu3 %v1410_v49  ;;  %v1339_v49 = vmul.f32 %v2658_v44, %v1338_v4  ;;  %vm1307_vm9 = vcmp.eq.f32.partialorder %v2652_v46, 0.0  ;;  %vm1341_vm14 = vcmp.eq.f32.partialorder %v2568_v14, inf }
 0x269   : > { %v1247_v30 = vmul.f32 %v1246_v42, %v1138_v39  ;;  %v1136_v2 = vmax.f32 %v1128_v7, 0.0 }
 0x26a   : > { %1463 = vmatpush.msrb.mxu3 %v1409_v26  ;;  %v1340_v25 = vmul.f32 %v1339_v49, %v2568_v14 }
 0x26b   : > { %v1710_v27 = vpop.eup %1709  ;;  %v2691_v3 = vadd.f32 1e-31, %v1247_v30  ;;  %v1217_v10 = vmul.f32 %v1216_v40, %v1136_v2  ;;  %v1308_v30 = vand.u32 2147483648, %v2652_v46 }
 0x26c   : > { %v2694_v57 = vpop.eup %1711  ;;  %v1287_v45 = vmul.f32 %v1710_v27, %v2632_v16  ;;  %v1425_v61 = vpop.permute.xlu1 %1424  ;;  %1464 = vmatpush.msrb.mxu3 %v1408_v50  ;;  %v1342_v11 = vsel %vm1341_vm14, %v2568_v14, %v1340_v25  ;;  %vm1379_vm14 = vcmp.eq.f32.partialorder %v2615_v59, 0.0 }
 0x26d   : > { %v1714_v13 = vpop.eup %1713  ;;  %1715 = vrsqrt.f32 %v2691_v3  ;;  %v2707_v60 = vadd.f32 1e-31, %v1217_v10  ;;  %1608 = vmatmul.msk.f32.vlgmr.msrb.gmra.mxu2 %vm372_vm1, %v1425_v61  ;;  %v1371_v32 = vmul.f32 %v2694_v57, %v2615_v59  ;;  %vm1305_vm1 = vcmp.eq.f32.partialorder %v2652_v46, inf }
 0x26e   : > { %v1288_v9 = vmul.f32 %v1710_v27, %v1287_v45  ;;  %v1299_v5 = vmul.f32 %v1714_v13, %v2652_v46  ;;  %v1114_v52 = vpop.permute.xlu0 %1113  ;;  %1465 = vmatpush.msrb.mxu3 %v1407_v53 }
 0x26f   : > { %1717 = vrsqrt.f32 %v2707_v60  ;;  %v1131_v62 = vsub.f32 %v2373_v37, %v1114_v52  ;;  %v1372_v41 = vmul.f32 %v2694_v57, %v1371_v32  ;;  %vm1329_vm7 = vcmp.eq.f32.partialorder %v2707_v60, inf }
 0x270   : > { %v1289_v23 = vmul.f32 0.5, %v1288_v9  ;;  %v1300_v19 = vmul.f32 %v1714_v13, %v1299_v5  ;;  %1466 = vmatpush.msrb.mxu3 %v1406_v33  ;;  %v1332_v20 = vand.u32 2147483648, %v2707_v60 }
 0x271   : > { %v1139_v34 = vmax.f32 %v1131_v62, 0.0  ;;  %v1373_v7 = vmul.f32 0.5, %v1372_v41  ;;  %v1344_v62 = vand.u32 2147483648, %v2568_v14  ;;  %v1380_v14 = vand.u32 2147483648, %v2615_v59 }
 0x272   : > { %v1301_v51 = vmul.f32 0.5, %v1300_v19  ;;  %v1290_v35 = vsub.f32 1.5, %v1289_v23 }
 0x273   : > { %v1716_v38 = vpop.eup %1715  ;;  %v1262_v37 = vmul.f32 %v1261_v21, %v1139_v34  ;;  %v1374_v58 = vsub.f32 1.5, %v1373_v7  ;;  %v1345_v34 = vsel %vm1343_vm15, %v1344_v62, %v1342_v11 }
 0x274   : > { %v1302_v47 = vsub.f32 1.5, %v1301_v51  ;;  %v1347_v8 = vmul.f32 %v1716_v38, %v2691_v3  ;;  %v1291_v39 = vmul.f32 %v1710_v27, %v1290_v35  ;;  %v1318_v27 = vsel %vm1317_vm0, %v2540_v31, %v1316_v24  ;;  %v1672_v24 = vld [vmem:[%s2837_s8] ss:$0 sm:$0xff] }
 0x275   : > { %v1718_v55 = vpop.eup %1717  ;;  %v2734_v1 = vadd.f32 1e-31, %v1262_v37  ;;  %v1321_v61 = vsel %vm1319_vm10, %v1320_v18, %v1318_v27  ;;  %v1296_v31 = vand.u32 2147483648, %v2632_v16  ;;  %vm1377_vm0 = vcmp.eq.f32.partialorder %v2615_v59, inf }
 0x276   : > { %v1303_v22 = vmul.f32 %v1714_v13, %v1302_v47  ;;  %v1323_v54 = vmul.f32 %v1718_v55, %v2707_v60  ;;  %v1348_v15 = vmul.f32 %v1716_v38, %v1347_v8  ;;  %v1292_v29 = vmul.f32 %v1291_v39, %v2632_v16 }
 0x277   : > { %1719 = vrsqrt.f32 %v2734_v1  ;;  %v1375_v13 = vmul.f32 %v2694_v57, %v1374_v58  ;;  %v1392_v33 = vrot.slane %v1321_v61, 6  ;;  %vm1355_vm10 = vcmp.eq.f32.partialorder %v2691_v3, 0.0 }
 0x278   : > { %v1304_v28 = vmul.f32 %v1303_v22, %v2652_v46  ;;  %v1324_v42 = vmul.f32 %v1718_v55, %v1323_v54  ;;  %v1349_v6 = vmul.f32 0.5, %v1348_v15  ;;  %v1294_v50 = vsel %vm1293_vm6, %v2632_v16, %v1292_v29 }
 0x279   : > { %v1297_v53 = vsel %vm1295_vm5, %v1296_v31, %v1294_v50  ;;  %v1376_v32 = vmul.f32 %v1375_v13, %v2615_v59  ;;  %v1396_v47 = vrot.slane %v1345_v34, 4  ;;  %v1368_v43 = vand.u32 2147483648, %v2734_v1 }
 0x27a   : > { %v1306_v36 = vsel %vm1305_vm1, %v2652_v46, %v1304_v28  ;;  %v1325_v2 = vmul.f32 0.5, %v1324_v42  ;;  %v1350_v40 = vsub.f32 1.5, %v1349_v6  ;;  %vm1331_vm1 = vcmp.eq.f32.partialorder %v2707_v60, 0.0 }
 0x27b   : > { %v1309_v26 = vsel %vm1307_vm9, %v1308_v30, %v1306_v36  ;;  %vm1353_vm9 = vcmp.eq.f32.partialorder %v2691_v3, inf }
 0x27c   : > { %v1326_v10 = vsub.f32 1.5, %v1325_v2  ;;  %v1351_v45 = vmul.f32 %v1716_v38, %v1350_v40  ;;  %v1390_v0 = vrot.slane %v1309_v26, 7  ;;  %v1378_v38 = vsel %vm1377_vm0, %v2615_v59, %v1376_v32 }
 0x27d   : > { %v1720_v44 = vpop.eup %1719  ;;  %v1381_v8 = vsel %vm1379_vm14, %v1380_v14, %v1378_v38 }
 0x27e   : > { %v1327_v46 = vmul.f32 %v1718_v55, %v1326_v10  ;;  %v1359_v12 = vmul.f32 %v1720_v44, %v2734_v1  ;;  %v1352_v52 = vmul.f32 %v1351_v45, %v2691_v3  ;;  %v1391_v23 = vsel %vm1070_vm3, %v1390_v0, %v1297_v53 }
 0x27f   : > { %v1393_v21 = vsel %vm1073_vm11, %v1392_v33, %v1391_v23  ;;  %vm1365_vm3 = vcmp.eq.f32.partialorder %v2734_v1, inf  ;;  %vm1367_vm11 = vcmp.eq.f32.partialorder %v2734_v1, 0.0  ;;  %v1402_v39 = vrot.slane %v1381_v8, 1 }
 0x280   : > { %v1328_v9 = vmul.f32 %v1327_v46, %v2707_v60  ;;  %v1360_v5 = vmul.f32 %v1720_v44, %v1359_v12  ;;  %v1354_v17 = vsel %vm1353_vm9, %v2691_v3, %v1352_v52 }
 0x282   : > { %v1330_v57 = vsel %vm1329_vm7, %v2707_v60, %v1328_v9  ;;  %v1361_v56 = vmul.f32 0.5, %v1360_v5  ;;  %v1356_v60 = vand.u32 2147483648, %v2691_v3 }
 0x283   : > { %v1333_v16 = vsel %vm1331_vm1, %v1332_v20, %v1330_v57 }
 0x284   : > { %v1362_v19 = vsub.f32 1.5, %v1361_v56  ;;  %v1394_v63 = vrot.slane %v1333_v16, 5  ;;  %v1357_v35 = vsel %vm1355_vm10, %v1356_v60, %v1354_v17 }
 0x285   : > { %v1398_v22 = vrot.slane %v1357_v35, 3 }
 0x286   : > { %v1363_v51 = vmul.f32 %v1720_v44, %v1362_v19  ;;  %v1395_v37 = vsel %vm1076_vm12, %v1394_v63, %v1393_v21  ;;  %vm2898_vm12 = vcmask 523264  }
 0x287   : > { %v1397_v55 = vsel %vm1079_vm13, %v1396_v47, %v1395_v37 }
 0x288   : > { %v1364_v41 = vmul.f32 %v1363_v51, %v2734_v1  ;;  %v1399_v15 = vsel %vm1082_vm8, %v1398_v22, %v1397_v55 }
 0x28a   : > { %v1366_v3 = vsel %vm1365_vm3, %v2734_v1, %v1364_v41 }
 0x28b   : > { %v1369_v4 = vsel %vm1367_vm11, %v1368_v43, %v1366_v3 }
 0x28c   : > { %v1400_v54 = vrot.slane %v1369_v4, 2 }
 0x28e   : > { %v1401_v7 = vsel %vm1085_vm2, %v1400_v54, %v1399_v15 }
 0x28f   : > { %v1403_v28 = vsel %vm1088_vm4, %v1402_v39, %v1401_v7 }
 0x290   : > { %v1405_v59 = vsel %vm2898_vm12, %v2407_v48, %v1403_v28 }
 0x291   : > { %1467 = vmatmul.f32.vlgmr.msrb.gmra.mxu3 %v1405_v59 }
 0x2f0   : > { %v1448_v1 = vpop.f32.mrf.mxu2 }
 0x314   : > { %v1468_v42 = vpop.f32.mrf.mxu3 }
 0x315   : > { %v1469_v6 = vadd.f32 %v1468_v42, %v1448_v1 }
 0x317   : > { %v1475_v48 = vadd.f32 %v1672_v24, %v1469_v6 }
 0x319   : > { %v1476_v49 = vmax.f32 %v1475_v48, 0.0 }
 0x31b   : > { %1477 = vst [vmem:[%s339_s27] sm:$0xff] %v1476_v49 }
 0x31c   : > { %1748 = shalt.err (!%p1745_p4)
}
 0x31d   : > { %1618 = dma.vmem_to_hbm [thread:$0]  (%p1875_p5), %s1492_s14, 128, %s1494_s16, %s1479_s13  }
 0x31e PF: > { %p1624_p7 = scmp.ge.s32.totalorder %s1783_s12, 2  ;;  %s1505_s21 = sand.u32 1, %s1771_s30  }
 0x31f   : > { %s1506_s29 = scalar_lea.sflag [#allocation3], %s1505_s21 }
 0x320   : > { %p1621_p8 = pnand %p1624_p7, %p1879_p6 }
 0x322   : > { %p1622_p9 = pneg %p1621_p8 }
 0x324   : > { %1766 = dma.done.wait (%p1622_p9), %s1506_s29, 128  }
 0x325   : > { %1768 = vsyncadd (%p1622_p9), %s1506_s29, 4294967168  ;;  %p19_p10 = scmp.ge.s32.totalorder %s1862_s15, 4   ;;  %s2899_s30 = smov %s1775_s10 }
 0x326   : > { %s2900_s10 = smov %s1779_s11  ;;  %s2901_s11 = smov %s1873_s18 }
 0x327   : > { %s2902_s12 = smov %s1862_s15  ;;  %21 = sbr.rel (!%p19_p10) target bundleno = 3 (0x3), region = 94 }
 0x32c   :  { %1512 = vsyncpa [#allocation3], 1 }
 0x32d   :  { %1514 = vsyncpa [#allocation3 + $0x1], 1 }

</bundles_post_ra>
